<compile_context>
chip_gen: v7x
topology: tpu7x:2x2x1
jax: 0.10.0
libtpu: 0.0.40
codegen_flags: <defaults>
</compile_context>

<pallas_src>
import jax
import jax.numpy as jnp
from jax.experimental import pallas as pl
from jax.experimental.pallas import tpu as pltpu

EPS = 1e-5


def bn_add_relu_conv_kernel(x_ref, res_ref, gb_ref, w_ref, o_ref, y_ref):
    # x_ref, res_ref : (M, Cin)        f32
    # gb_ref         : (2, Cin)        f32   row 0 = gamma, row 1 = beta
    # w_ref          : (Cin, Cout_blk) bf16  (one Cout chunk per grid step)
    # o_ref          : (M, Cout_blk)   f32
    # y_ref          : (M, Cin)        bf16  VMEM scratch (BN+add+ReLU result)

    # Compute normalized/activated input only on the first sequential step of
    # each core; later steps reuse the scratch while their weight chunk has
    # already been prefetched by the BlockSpec pipeline.
    @pl.when(pl.program_id(1) == 0)
    def _():
        x = x_ref[...].astype(jnp.float32)
        mean = jnp.mean(x, axis=0, keepdims=True)               # (1, Cin)
        diff = x - mean
        var = jnp.mean(diff * diff, axis=0, keepdims=True)      # biased var
        inv_std = jax.lax.rsqrt(var + EPS)
        y = diff * (inv_std * gb_ref[0:1, :]) + gb_ref[1:2, :]
        y = jnp.maximum(y + res_ref[...].astype(jnp.float32), 0.0)
        y_ref[...] = y.astype(jnp.bfloat16)

    # 1x1 conv (no bias) == channel matmul on the MXU; bf16 in, f32 accumulate.
    o_ref[...] = jnp.dot(
        y_ref[...], w_ref[...], preferred_element_type=jnp.float32
    ).astype(o_ref.dtype)


def prepare_params(gamma, beta, conv_w, nblocks):
    """One-time parameter prep (keep OFF the hot path): pack gamma/beta and
    pre-materialize bf16 (Cin, Cout) weight blocks."""
    Cout, Cin = conv_w.shape[0], conv_w.shape[1]
    assert Cout % nblocks == 0
    blk = Cout // nblocks
    assert blk % 8 == 0, "Cout block must be sublane-aligned"
    gb2d = jnp.stack(
        [gamma.astype(jnp.float32), beta.astype(jnp.float32)], axis=0
    )  # (2, Cin)
    w = conv_w.reshape(Cout, Cin).astype(jnp.bfloat16)   # cast once
    w = jnp.transpose(w, (1, 0))                          # (Cin, Cout)
    w_blocks = jnp.transpose(w.reshape(Cin, nblocks, blk), (1, 0, 2))
    return gb2d, w_blocks                                 # (nblocks, Cin, blk)


def default_cout_split():
    """(parallel, sequential) Cout-block split.  v7x: 2 TCs x 2 chunks each so
    the second weight chunk DMA hides behind the first step; single-TC chips:
    1 x 2 so BN is computed exactly once with a 2-step weight pipeline."""
    try:
        kind = jax.devices()[0].device_kind.lower()
    except Exception:
        kind = ""
    if "v7" in kind:
        return 2, 2
    return 1, 2


def bn_add_relu_conv(x_nchw, res_nchw, gb2d, w_blocks, *, par=1):
    """x/res: (N, C, H, W) f32; gb2d: (2, C) f32; w_blocks: (nblocks, C, blk) bf16."""
    N, C, H, W = x_nchw.shape
    M = N * H * W
    nblocks, Cin, blk = w_blocks.shape
    Cout = nblocks * blk
    assert Cin == C
    assert nblocks % par == 0
    seq = nblocks // par

    # NCHW -> lane-dense (M, Cin).  Small (132 KB) wrapper-side transpose.
    x2d = jnp.transpose(x_nchw, (0, 2, 3, 1)).reshape(M, C)
    r2d = jnp.transpose(res_nchw, (0, 2, 3, 1)).reshape(M, C)

    out3d = pl.pallas_call(
        bn_add_relu_conv_kernel,
        out_shape=jax.ShapeDtypeStruct((nblocks, M, blk), jnp.float32),
        grid=(par, seq),
        in_specs=[
            pl.BlockSpec((M, C), lambda i, j: (0, 0)),        # x (resident)
            pl.BlockSpec((M, C), lambda i, j: (0, 0)),        # res (resident)
            pl.BlockSpec((2, C), lambda i, j: (0, 0)),        # gamma/beta packed
            pl.BlockSpec((None, C, blk), lambda i, j: (i * seq + j, 0, 0)),  # weight chunk
        ],
        out_specs=pl.BlockSpec((None, M, blk), lambda i, j: (i * seq + j, 0, 0)),
        scratch_shapes=[pltpu.VMEM((M, C), jnp.bfloat16)],    # cached y
        compiler_params=pltpu.CompilerParams(
            dimension_semantics=("parallel", "arbitrary"),
        ),
        cost_estimate=pl.CostEstimate(
            flops=2 * M * C * Cout,
            transcendentals=C,
            bytes_accessed=Cout * C * 2 + 2 * M * C * 4 + M * Cout * 4 + 2 * C * 4,
        ),
    )(x2d, r2d, gb2d, w_blocks)

    # (nblocks, M, blk) -> (M, Cout) -> NCHW.
    out2d = jnp.transpose(out3d, (1, 0, 2)).reshape(M, Cout)
    return jnp.transpose(out2d.reshape(N, H, W, Cout), (0, 3, 1, 2))


def reference(x_nchw, res_nchw, gamma, beta, conv_w):
    mean = jnp.mean(x_nchw, axis=(0, 2, 3), keepdims=True)
    var = jnp.mean((x_nchw - mean) ** 2, axis=(0, 2, 3), keepdims=True)
    y = (x_nchw - mean) * jax.lax.rsqrt(var + EPS)
    y = y * gamma[None, :, None, None] + beta[None, :, None, None]
    y = jnp.maximum(y + res_nchw, 0.0)
    w = conv_w.reshape(conv_w.shape[0], conv_w.shape[1])  # (Cout, Cin)
    # Mirror the kernel's bf16 MXU inputs / f32 accumulation.
    return jnp.einsum(
        "nchw,oc->nohw",
        y.astype(jnp.bfloat16),
        w.astype(jnp.bfloat16),
        preferred_element_type=jnp.float32,
    )


if __name__ == "__main__":
    key = jax.random.PRNGKey(0)
    k1, k2, k3, k4, k5 = jax.random.split(key, 5)

    N, C, H, W = 1, 672, 7, 7  # channel count fixed by the module (672)
    Cout = 672

    x120 = jax.random.normal(k1, (N, C, H, W), dtype=jnp.float32)
    x129 = jax.random.normal(k2, (N, C, H, W), dtype=jnp.float32)

    gamma = 1.0 + 0.1 * jax.random.normal(k3, (C,), dtype=jnp.float32)
    beta = 0.1 * jax.random.normal(k4, (C,), dtype=jnp.float32)
    conv_w = jax.random.normal(k5, (Cout, C, 1, 1), dtype=jnp.float32) * (1.0 / (C ** 0.5))

    par, seq = default_cout_split()
    # One-time weight/param prep (reshape + transpose + bf16 cast): NOT on the hot path.
    gb2d, w_blocks = jax.block_until_ready(prepare_params(gamma, beta, conv_w, par * seq))

    out = bn_add_relu_conv(x120, x129, gb2d, w_blocks, par=par)
    out = jax.block_until_ready(out)

    ref = reference(x120, x129, gamma, beta, conv_w)
    assert out.shape == (N, Cout, H, W), out.shape
    assert jnp.allclose(out, ref, rtol=5e-3, atol=5e-3), float(jnp.max(jnp.abs(out - ref)))

    print("KERNEL_OK")
</pallas_src>

<mosaic_0001>
module attributes {stable_mosaic.version = 11 : i64} {
  func.func @bn_add_relu_conv_kernel(%arg0: i32, %arg1: i32, %arg2: memref<49x672xf32, #tpu.memory_space<vmem>>, %arg3: memref<49x672xf32, #tpu.memory_space<vmem>>, %arg4: memref<2x672xf32, #tpu.memory_space<vmem>>, %arg5: memref<1x672x336xbf16, #tpu.memory_space<vmem>>, %arg6: memref<1x49x336xf32, #tpu.memory_space<vmem>>, %arg7: memref<49x672xbf16, #tpu.memory_space<vmem>>) attributes {dimension_semantics = [#tpu.dimension_semantics<parallel>, #tpu.dimension_semantics<arbitrary>], iteration_bounds = array<i64: 1, 2>, scalar_prefetch = 0 : i64, scratch_operands = 1 : i64, tpu.core_type = #tpu.core_type<tc>, window_params = [{pipeline_mode = #tpu.pipeline_mode<synchronous>, transform_indices = @transform_0, window_bounds = array<i64: 49, 672>}, {pipeline_mode = #tpu.pipeline_mode<synchronous>, transform_indices = @transform_1, window_bounds = array<i64: 49, 672>}, {pipeline_mode = #tpu.pipeline_mode<synchronous>, transform_indices = @transform_2, window_bounds = array<i64: 2, 672>}, {transform_indices = @transform_3, window_bounds = array<i64: 1, 672, 336>}, {transform_indices = @transform_4, window_bounds = array<i64: 1, 49, 336>}]} {
    %c0_i32 = arith.constant 0 : i32
    %0 = arith.cmpi eq, %arg1, %c0_i32 : i32
    %1 = arith.extui %0 : i1 to i32
    %c0_i32_0 = arith.constant 0 : i32
    %2 = arith.cmpi ne, %1, %c0_i32_0 : i32
    scf.if %2 {
      %c0_8 = arith.constant 0 : index
      %c0_9 = arith.constant 0 : index
      %10 = vector.load %arg2[%c0_8, %c0_9] : memref<49x672xf32, #tpu.memory_space<vmem>>, vector<49x672xf32>
      %cst_10 = arith.constant dense<0.000000e+00> : vector<672xf32>
      %11 = vector.multi_reduction <add>, %10, %cst_10 [0] : vector<49x672xf32> to vector<672xf32>
      %12 = vector.shape_cast %11 : vector<672xf32> to vector<1x672xf32>
      %cst_11 = arith.constant 4.900000e+01 : f32
      %13 = vector.broadcast %cst_11 : f32 to vector<1x672xf32>
      %14 = arith.divf %12, %13 : vector<1x672xf32>
      %15 = vector.broadcast %14 : vector<1x672xf32> to vector<49x672xf32>
      %16 = arith.subf %10, %15 : vector<49x672xf32>
      %17 = arith.mulf %16, %16 : vector<49x672xf32>
      %cst_12 = arith.constant dense<0.000000e+00> : vector<672xf32>
      %18 = vector.multi_reduction <add>, %17, %cst_12 [0] : vector<49x672xf32> to vector<672xf32>
      %19 = vector.shape_cast %18 : vector<672xf32> to vector<1x672xf32>
      %cst_13 = arith.constant 4.900000e+01 : f32
      %20 = vector.broadcast %cst_13 : f32 to vector<1x672xf32>
      %21 = arith.divf %19, %20 : vector<1x672xf32>
      %cst_14 = arith.constant 9.99999974E-6 : f32
      %22 = vector.broadcast %cst_14 : f32 to vector<1x672xf32>
      %23 = arith.addf %21, %22 : vector<1x672xf32>
      %24 = math.rsqrt %23 : vector<1x672xf32>
      %c0_15 = arith.constant 0 : index
      %c0_16 = arith.constant 0 : index
      %25 = vector.load %arg4[%c0_15, %c0_16] : memref<2x672xf32, #tpu.memory_space<vmem>>, vector<1x672xf32>
      %26 = arith.mulf %24, %25 : vector<1x672xf32>
      %27 = vector.broadcast %26 : vector<1x672xf32> to vector<49x672xf32>
      %28 = arith.mulf %16, %27 : vector<49x672xf32>
      %c1 = arith.constant 1 : index
      %c0_17 = arith.constant 0 : index
      %29 = vector.load %arg4[%c1, %c0_17] : memref<2x672xf32, #tpu.memory_space<vmem>>, vector<1x672xf32>
      %30 = vector.broadcast %29 : vector<1x672xf32> to vector<49x672xf32>
      %31 = arith.addf %28, %30 : vector<49x672xf32>
      %c0_18 = arith.constant 0 : index
      %c0_19 = arith.constant 0 : index
      %32 = vector.load %arg3[%c0_18, %c0_19] : memref<49x672xf32, #tpu.memory_space<vmem>>, vector<49x672xf32>
      %33 = arith.addf %31, %32 : vector<49x672xf32>
      %cst_20 = arith.constant 0.000000e+00 : f32
      %34 = vector.broadcast %cst_20 : f32 to vector<49x672xf32>
      %35 = arith.maximumf %33, %34 : vector<49x672xf32>
      %36 = arith.truncf %35 : vector<49x672xf32> to vector<49x672xbf16>
      %c0_21 = arith.constant 0 : index
      %c0_22 = arith.constant 0 : index
      %37 = vector.load %arg7[%c0_21, %c0_22] : memref<49x672xbf16, #tpu.memory_space<vmem>>, vector<49x672xbf16>
      tpu.vector_store %arg7[%c0_21, %c0_22], %36 {strides = array<i32>} : memref<49x672xbf16, #tpu.memory_space<vmem>>, vector<49x672xbf16>,
    } else {
    }
    %c0 = arith.constant 0 : index
    %c0_1 = arith.constant 0 : index
    %3 = vector.load %arg7[%c0, %c0_1] : memref<49x672xbf16, #tpu.memory_space<vmem>>, vector<49x672xbf16>
    %c0_2 = arith.constant 0 : index
    %c0_3 = arith.constant 0 : index
    %c0_4 = arith.constant 0 : index
    %4 = vector.load %arg5[%c0_2, %c0_3, %c0_4] : memref<1x672x336xbf16, #tpu.memory_space<vmem>>, vector<1x672x336xbf16>
    %5 = vector.shape_cast %4 : vector<1x672x336xbf16> to vector<672x336xbf16>
    %cst = arith.constant dense<0.000000e+00> : vector<49x336xf32>
    %6 = tpu.matmul %3, %5, %cst {dimension_numbers = #tpu.dot_dimension_numbers<[1], [0], [0], [1], [0, 0, 1, 1], [], []>} : vector<49x672xbf16>, vector<672x336xbf16>, vector<49x336xf32> -> vector<49x336xf32>
    %c0_5 = arith.constant 0 : index
    %c0_6 = arith.constant 0 : index
    %c0_7 = arith.constant 0 : index
    %7 = vector.load %arg6[%c0_5, %c0_6, %c0_7] : memref<1x49x336xf32, #tpu.memory_space<vmem>>, vector<1x49x336xf32>
    %8 = vector.shape_cast %7 : vector<1x49x336xf32> to vector<49x336xf32>
    %9 = vector.shape_cast %6 : vector<49x336xf32> to vector<1x49x336xf32>
    tpu.vector_store %arg6[%c0_5, %c0_6, %c0_7], %9 {strides = array<i32>} : memref<1x49x336xf32, #tpu.memory_space<vmem>>, vector<1x49x336xf32>,
    return
  }
  func.func @transform_0(%arg0: i32, %arg1: i32) -> (i32, i32) {
    %c0_i32 = arith.constant 0 : i32
    %c0_i32_0 = arith.constant 0 : i32
    %c0_i32_1 = arith.constant 0 : i32
    return %c0_i32, %c0_i32_0 : i32, i32
  }
  func.func @transform_1(%arg0: i32, %arg1: i32) -> (i32, i32) {
    %c0_i32 = arith.constant 0 : i32
    %c0_i32_0 = arith.constant 0 : i32
    %c0_i32_1 = arith.constant 0 : i32
    return %c0_i32, %c0_i32_0 : i32, i32
  }
  func.func @transform_2(%arg0: i32, %arg1: i32) -> (i32, i32) {
    %c0_i32 = arith.constant 0 : i32
    %c0_i32_0 = arith.constant 0 : i32
    %c0_i32_1 = arith.constant 0 : i32
    return %c0_i32, %c0_i32_0 : i32, i32
  }
  func.func @transform_3(%arg0: i32, %arg1: i32) -> (i32, i32, i32) {
    %c2_i32 = arith.constant 2 : i32
    %0 = arith.muli %arg0, %c2_i32 : i32
    %1 = arith.addi %0, %arg1 : i32
    %c0_i32 = arith.constant 0 : i32
    %c0_i32_0 = arith.constant 0 : i32
    %c0_i32_1 = arith.constant 0 : i32
    return %1, %c0_i32, %c0_i32_0 : i32, i32, i32
  }
  func.func @transform_4(%arg0: i32, %arg1: i32) -> (i32, i32, i32) {
    %c2_i32 = arith.constant 2 : i32
    %0 = arith.muli %arg0, %c2_i32 : i32
    %1 = arith.addi %0, %arg1 : i32
    %c0_i32 = arith.constant 0 : i32
    %c0_i32_0 = arith.constant 0 : i32
    %c0_i32_1 = arith.constant 0 : i32
    return %1, %c0_i32, %c0_i32_0 : i32, i32, i32
  }
}

</mosaic_0001>

<bundles_post_ra>
// kernel: tpu_custom_call.1
= control target key start
LH: loop header
LB: loop body
LE: loop exit
PB: predicated region body
PF: predicated region fallthrough
CT: control target
= control target key end

     0   :  { %9 = vsyncpa [#allocation4], 0  ;;  %s4567_s0 = inlined_call_operand.hbm [shape: f32[49,672], index: 0, kind: input, shape index: {}]   ;;  %s4568_s1 = inlined_call_operand.hbm [shape: f32[49,672], index: 1, kind: input, shape index: {}]   ;;  %s4569_s2 = inlined_call_operand.hbm [shape: f32[2,672], index: 2, kind: input, shape index: {}]   ;;  %s4570_s3 = inlined_call_operand.hbm [shape: bf16[2,672,336], index: 3, kind: input, shape index: {}]   ;;  %s4571_s4 = inlined_call_operand.vmem [shape: f32[2,49,336], index: 4, kind: output, shape index: {}]  }
   0x1   :  { %10 = vsyncpa [#allocation6], 0 }
   0x2   :  { %11 = vsyncpa [#allocation9], 0 }
   0x3   :  { %13 = vsyncpa [#allocation9 + $0x1], 0  ;;  %s3459_s15 = smov 0   ;;  %s3461_s16 = smov 0  }
   0x4   :  { %s3463_s17 = smov 0   ;;  %s3465_s18 = smov 0  }
   0x5   :  { %s3467_s19 = smov 0   ;;  %s3469_s20 = smov 0  }
   0x6 LB: > { %s2617_s21 = sadd.s32 4294967295, %s3423_s20   ;;  %p118_p0 = scmp.ne.s32.totalorder %s3407_s16, %s3403_s15  ;;  %s3423_s20 = sphi %s3469_s20, %s19_s20   ;;  %s3419_s19 = sphi %s3467_s19, %s4688_s19   ;;  %s3415_s18 = sphi %s3465_s18, %s4687_s18   ;;  %s3411_s17 = sphi %s3463_s17, %s4686_s17   ;;  %s3407_s16 = sphi %s3461_s16, %s4685_s16   ;;  %s3403_s15 = sphi %s3459_s15, %s4684_s15  }
   0x7   : > { %p3489_p1 = scmp.eq.s32.totalorder %s2617_s21, 0  ;;  %p2619_p2 = scmp.ge.s32.totalorder %s3423_s20, 1 }
   0x8   : > { %p159_p3 = scmp.lt.s32.totalorder %s3423_s20, 3  ;;  %s3425_s25 = smov [#allocation5]  }
   0x9   : > { %s4604_s22 = scalar_select %p3489_p1, 1, 0 }
   0xa   : > { %p3497_p4 = por %p3489_p1, %p118_p0  ;;  %p3501_p5 = pnand %p2619_p2, %p159_p3 }
   0xb   : > { %s184_s26 = sshll.u32 %s3425_s25, 4  ;;  %s3426_s28 = smov [#allocation3]   ;;  %s185_s26 = int_to_ptr.vmem [resolvable:$true] %s184_s26 }
   0xc   : > { %s4605_s23 = scalar_select %p3497_p4, 1, 0 }
   0xd   : > { %s4606_s24 = scalar_select %p3501_p5, 1, 0 }
   0xe   : > { %p2961_p6 = pneg %p3501_p5  ;;  %s171_s29 = sshll.u32 %s3426_s28, 4  ;;  %s172_s29 = int_to_ptr.vmem [resolvable:$true] %s171_s29 }
   0xf   : > { %s3251_s6 = scalar_lea.hbm %s4568_s1, 5376 }
  0x10   : > { %p3509_p7 = pnand %p2961_p6, %p3489_p1  ;;  %p3252_p8 = scmp.ne.s32.totalorder %s4568_s1, %s3251_s6 }
  0x11   : > { %p3258_p12 = scmp.lt.u32.totalorder %s3251_s6, %s4568_s1 }
  0x12   : > { %p3521_p9 = pneg %p3509_p7 }
  0x14   : > { %p3254_p10 = pnand %p3521_p9, %p3252_p8 }
  0x16   : > { %p3255_p11 = pneg %p3254_p10 }
  0x18   : > { %p3260_p13 = pnand %p3258_p12, %p3255_p11 }
  0x1a   : > { %3263 = shalt.err (!%p3260_p13)
}
  0x1b   : > { %s3264_s12 = scalar_lea.vmem %s185_s26, 5376  ;;  %p3272_p6 = scmp.lt.s32.totalorder %s185_s26, %s185_s26 }
  0x1c   : > { %p3265_p0 = scmp.ne.s32.totalorder %s185_s26, %s3264_s12  ;;  %p3273_p4 = scmp.lt.s32.totalorder %s3264_s12, %s3264_s12 }
  0x1e   : > { %p3267_p2 = pnand %p3265_p0, %p3521_p9  ;;  %p3274_p1 = por %p3273_p4, %p3272_p6 }
  0x20   : > { %p3268_p3 = pneg %p3267_p2 }
  0x22   : > { %p3275_p5 = pnand %p3274_p1, %p3268_p3 }
  0x24   : > { %3278 = shalt.err (!%p3275_p5)
}
  0x25   : > { %s3427_s13 = smov 768   ;;  %s3428_s14 = smov 48  }
  0x26   : > { %2967 = dma.hbm_to_vmem [thread:$0]  (!%p3509_p7), %s4568_s1, 5376, %s185_s26, [#allocation6], %s3427_s13, %s3427_s13, %s3428_s14  }
  0x27   : > { %s3429_s25 = smov [#allocation7]   ;;  %s3279_s6 = scalar_lea.hbm %s4567_s0, 5376 }
  0x28   : > { %s198_s28 = sshll.u32 %s3429_s25, 4  ;;  %p3280_p1 = scmp.ne.s32.totalorder %s4567_s0, %s3279_s6  ;;  %s199_s28 = int_to_ptr.vmem [resolvable:$true] %s198_s28 }
  0x29   : > { %p3286_p8 = scmp.lt.u32.totalorder %s3279_s6, %s4567_s0 }
  0x2a   : > { %p3282_p4 = pnand %p3280_p1, %p3521_p9 }
  0x2c   : > { %p3283_p5 = pneg %p3282_p4 }
  0x2e   : > { %p3288_p10 = pnand %p3286_p8, %p3283_p5 }
  0x30   : > { %3291 = shalt.err (!%p3288_p10)
}
  0x31   : > { %s3292_s26 = scalar_lea.vmem %s172_s29, 5376  ;;  %p3300_p0 = scmp.lt.s32.totalorder %s172_s29, %s172_s29 }
  0x32   : > { %p3293_p11 = scmp.ne.s32.totalorder %s172_s29, %s3292_s26  ;;  %p3301_p2 = scmp.lt.s32.totalorder %s3292_s26, %s3292_s26 }
  0x34   : > { %p3295_p12 = pnand %p3293_p11, %p3521_p9  ;;  %p3302_p3 = por %p3301_p2, %p3300_p0 }
  0x36   : > { %p3296_p13 = pneg %p3295_p12 }
  0x38   : > { %p3303_p6 = pnand %p3302_p3, %p3296_p13 }
  0x3a   : > { %3306 = shalt.err (!%p3303_p6)
}
  0x3b   : > { %2964 = dma.hbm_to_vmem [thread:$0]  (!%p3509_p7), %s4567_s0, 5376, %s172_s29, [#allocation4], %s3427_s13, %s3427_s13, %s3428_s14  }
  0x3c   : > { %s3307_s30 = scalar_lea.hbm %s4569_s2, 192 }
  0x3d   : > { %p3308_p1 = scmp.ne.s32.totalorder %s4569_s2, %s3307_s30  ;;  %p3314_p8 = scmp.lt.u32.totalorder %s3307_s30, %s4569_s2 }
  0x3f   : > { %p3310_p4 = pnand %p3308_p1, %p3521_p9 }
  0x41   : > { %p3311_p5 = pneg %p3310_p4 }
  0x43   : > { %p3316_p10 = pnand %p3314_p8, %p3311_p5 }
  0x45   : > { %3319 = shalt.err (!%p3316_p10)
}
  0x46   : > { %s3320_s10 = scalar_lea.vmem %s199_s28, 192  ;;  %p3328_p0 = scmp.lt.s32.totalorder %s199_s28, %s199_s28 }
  0x47   : > { %p3321_p11 = scmp.ne.s32.totalorder %s199_s28, %s3320_s10  ;;  %p3329_p2 = scmp.lt.s32.totalorder %s3320_s10, %s3320_s10 }
  0x49   : > { %p3323_p12 = pnand %p3321_p11, %p3521_p9  ;;  %p3330_p3 = por %p3329_p2, %p3328_p0 }
  0x4b   : > { %p3324_p13 = pneg %p3323_p12 }
  0x4d   : > { %p3331_p6 = pnand %p3330_p3, %p3324_p13 }
  0x4f   : > { %3334 = shalt.err (!%p3331_p6)
}
  0x50   : > { %2970 = dma.hbm_to_vmem [thread:$0]  (!%p3509_p7), %s4569_s2, 192, %s199_s28, [#allocation6]  }
  0x51   : > { %s105_s9 = sadd.s32 1, %s3411_s17  ;;  %s28_s14 = sadd.s32 1, %s3419_s19 }
  0x52   : > { %p112_p9 = scmp.ne.s32.totalorder %s3411_s17, %s3407_s16  ;;  %p29_p1 = scmp.ge.s32.totalorder %s28_s14, 2 }
  0x53   : > { %p113_p4 = scmp.eq.s32.totalorder %s3423_s20, 0  ;;  %p2978_p5 = scmp.lt.s32.totalorder %s3423_s20, 2 }
  0x54   : > { %s209_s27 = sand.u32 1, %s3411_s17   ;;  %s4690_s14 = smov (%p29_p1, %s28_s14), 0 }
  0x55   : > { %p114_p8 = por %p113_p4, %p112_p9  ;;  %s102_s11 = ssub.s32 %s3419_s19, %s4690_s14 }
  0x56   : > { %s2943_s26 = smul.u32 1008, %s209_s27  ;;  %p103_p10 = scmp.eq.s32.totalorder %s102_s11, 0 }
  0x57   : > { %s2944_s12 = smul.u32 16128, %s3419_s19  ;;  %p3585_p11 = pnand %p2978_p5, %p114_p8 }
  0x58   : > { %s3590_s28 = scalar_select %p103_p10, %s3411_s17, %s105_s9  }
  0x59   : > { %s3595_s30 = scalar_lea.hbm %s4570_s3, %s2944_s12  ;;  %s213_s5 = scalar_lea.vmem [#allocation8], %s2943_s26 }
  0x5a   : > { %s222_s6 = sshll.u32 %s213_s5, 4  ;;  %s3599_s7 = scalar_lea.sflag [#allocation9], %s209_s27  ;;  %s3597_s6 = int_to_ptr.vmem [resolvable:$true] %s222_s6 }
  0x5b   : > { %s3335_s8 = scalar_lea.hbm %s3595_s30, 16128  ;;  %p3337_p12 = pneg %p3585_p11 }
  0x5c   : > { %p3336_p7 = scmp.ne.s32.totalorder %s3595_s30, %s3335_s8  ;;  %s3340_s13 = scalar_lea.hbm %s4570_s3, 32256 }
  0x5d   : > { %p3341_p2 = scmp.lt.u32.totalorder %s3595_s30, %s4570_s3  ;;  %p3342_p3 = scmp.lt.u32.totalorder %s3340_s13, %s3335_s8 }
  0x5e   : > { %p3338_p13 = pnand %p3337_p12, %p3336_p7  ;;  %p3344_p9 = scmp.lt.u32.totalorder %s3335_s8, %s3595_s30 }
  0x5f   : > { %p3343_p6 = por %p3342_p3, %p3341_p2 }
  0x60   : > { %p3339_p0 = pneg %p3338_p13 }
  0x61   : > { %p3345_p1 = por %p3344_p9, %p3343_p6 }
  0x63   : > { %p3346_p4 = pnand %p3345_p1, %p3339_p0 }
  0x65   : > { %3349 = shalt.err (!%p3346_p4)
}
  0x66   : > { %s3350_s27 = scalar_lea.vmem %s3597_s6, 16128  ;;  %s3430_s26 = smov [#allocation8]  }
  0x67   : > { %p3351_p5 = scmp.ne.s32.totalorder %s3597_s6, %s3350_s27  ;;  %s3355_s12 = sshll.u32 %s3430_s26, 4  ;;  %s3356_s12 = int_to_ptr.vmem [resolvable:$false] %s3355_s12 }
  0x68   : > { %s3357_s21 = scalar_lea.vmem %s3356_s12, 32256  ;;  %p3358_p7 = scmp.lt.s32.totalorder %s3597_s6, %s3356_s12 }
  0x69   : > { %p3353_p8 = pnand %p3351_p5, %p3337_p12  ;;  %p3359_p13 = scmp.lt.s32.totalorder %s3357_s21, %s3350_s27 }
  0x6b   : > { %p3354_p10 = pneg %p3353_p8  ;;  %p3360_p2 = por %p3359_p13, %p3358_p7 }
  0x6d   : > { %p3361_p3 = pnand %p3360_p2, %p3354_p10 }
  0x6f   : > { %3364 = shalt.err (!%p3361_p3)
}
  0x70   : > { %s3431_s25 = smov 192   ;;  %s3432_s5 = smov 12  }
  0x71   : > { %2974 = dma.hbm_to_vmem [thread:$0]  (!%p3585_p11), %s3595_s30, 16128, %s3597_s6, %s3599_s7, %s3431_s25, %s3431_s25, %s3432_s5  }
  0x72   : > { %p4610_p12 = scmp.ne.s32.totalorder %s4606_s24, 0 }
  0x73   : > { %p4611_p0 = scmp.ne.s32.totalorder (!%p4610_p12), %s4604_s22, 0 }
  0x74   : > { %234 = sbr.rel (%p4610_p12) target bundleno = 669 (0x29d), region = 36 }
  0x7b   : > { %3390 = dma.done.wait (%p4611_p0), [#allocation4], 5376  }
  0x7c   : > { %3392 = vsyncadd (%p4611_p0), [#allocation4], 4294961920 }
  0x7d   : > { %3394 = dma.done.wait (%p4611_p0), [#allocation6], 5568  }
  0x7e   : > { %3396 = vsyncadd (%p4611_p0), [#allocation6], 4294961728  ;;  %s248_s8 = sand.u32 1, %s3407_s16   ;;  %p4612_p11 = scmp.ne.s32.totalorder %s4605_s23, 0 }
  0x7f   : > { %s2945_s15 = smul.u32 1008, %s248_s8  ;;  %s249_s30 = scalar_lea.sflag [#allocation9], %s248_s8 }
  0x81   : > { %s3638_s6 = scalar_lea.vmem [#allocation8], %s2945_s15 }
  0x82   : > { %3398 = dma.done.wait (%p4612_p11), %s249_s30, 16128  }
  0x83   : > { %3400 = vsyncadd (%p4612_p11), %s249_s30, 4294951168  ;;  %p283_p6 = scmp.lt.s32.totalorder %s3415_s18, 1  ;;  %p2630_p9 = scmp.ne.s32.totalorder %s3415_s18, 0 }
  0x85   : > { %s284_s24 = scalar_select %p283_p6, %s3415_s18, 1 }
  0x86   : > { %294 = sbr.rel (%p2630_p9) target bundleno = 284 (0x11c), region = 56 }
  0x87   : > { %s2946_s7 = smul.u32 168, %s284_s24 }
  0x89   : > { %s3649_s29 = scalar_lea.vmem %s4571_s4, %s2946_s7 }
  0x8d   : > { %v3652_v0 = vld [vmem:[#allocation3] sm:$0xff]  ;;  %v3654_v1 = vld [vmem:[#allocation3 + $0x8] sm:$0xff]  ;;  %v3656_v2 = vld [vmem:[#allocation3 + $0x30] sm:$0xff]  ;;  %v619_v11 = vlaneseq  ;;  %vm342_vm0 = vcmask 1040384   ;;  %vm403_vm1 = vcmask 261120   ;;  %vm415_vm2 = vcmask 253952  }
  0x8e   : > { %v3658_v3 = vld [vmem:[#allocation3 + $0x38] sm:$0xff]  ;;  %v3660_v4 = vld [vmem:[#allocation3 + $0x60] sm:$0xff]  ;;  %v3662_v5 = vld [vmem:[#allocation3 + $0x68] sm:$0xff]  ;;  %v337_v6 = vadd.f32 %v3656_v2, %v3652_v0  ;;  %vm1056_vm3 = vcmask 1043456   ;;  %vm1057_vm4 = vcmask 261124   ;;  %vm1078_vm6 = vcmask 1044484  }
  0x8f   : > { %v3666_v7 = vld [vmem:[#allocation3 + $0x90] sm:$0xff]  ;;  %v351_v8 = vadd.f32 %v3658_v3, %v3654_v1  ;;  %v3670_v9 = vld [vmem:[#allocation3 + $0x98] sm:$0xff]  ;;  %v3673_v12 = vld [vmem:[#allocation3 + $0xc0] sm:$0xff]  ;;  %v3691_v23 = vshrl.u32 %v619_v11, 7  ;;  %vm1076_vm5 = vsmask.f32 256 }
  0x90   : > { %v338_v10 = vadd.f32 %v337_v6, %v3660_v4  ;;  %v3676_v14 = vld [vmem:[#allocation3 + $0xc8] sm:$0xff]  ;;  %v3678_v15 = vld [vmem:[#allocation3 + $0xf0] sm:$0xff]  ;;  %v3680_v16 = vld [vmem:[#allocation3 + $0x120] sm:$0x1]  ;;  %vm1079_vm7 = vsmask.f32 4352 }
  0x91   : > { %v352_v13 = vadd.f32 %v351_v8, %v3662_v5  ;;  %v3683_v18 = vld [vmem:[#allocation3 + $0xf8] sm:$0xff]  ;;  %v3685_v19 = vld [vmem:[#allocation3 + $0x128] sm:$0x1]  ;;  %v3688_v21 = vld [vmem:[#allocation3 + $0x10] sm:$0xff]  ;;  %v343_v27 = vsel %vm342_vm0, %v3680_v16, 0.0  ;;  %v3727_v44 = vsub.s32 0, %v3691_v23 }
  0x92   : > { %v339_v17 = vadd.f32 %v338_v10, %v3666_v7  ;;  %v3693_v24 = vld [vmem:[#allocation3 + $0x18] sm:$0xff]  ;;  %v3695_v25 = vld [vmem:[#allocation3 + $0x40] sm:$0xff]  ;;  %v3697_v26 = vld [vmem:[#allocation3 + $0x48] sm:$0xff]  ;;  %v356_v34 = vsel %vm342_vm0, %v3685_v19, 0.0  ;;  %vm1088_vm12 = vcmask 258052  }
  0x93   : > { %v353_v20 = vadd.f32 %v352_v13, %v3670_v9  ;;  %v3702_v29 = vld [vmem:[#allocation3 + $0x70] sm:$0xff]  ;;  %v3704_v30 = vld [vmem:[#allocation3 + $0x78] sm:$0xff]  ;;  %v364_v31 = vadd.f32 %v3695_v25, %v3688_v21  ;;  %v377_v32 = vadd.f32 %v3697_v26, %v3693_v24  ;;  %v3713_v35 = vld [vmem:[#allocation3 + $0xa0] sm:$0xff] }
  0x94   : > { %v340_v22 = vadd.f32 %v339_v17, %v3673_v12  ;;  %v3715_v36 = vld [vmem:[#allocation3 + $0xa8] sm:$0xff]  ;;  %v3718_v38 = vld [vmem:[#allocation3 + $0xd0] sm:$0xff]  ;;  %v3720_v39 = vld [vmem:[#allocation3 + $0xd8] sm:$0xff] }
  0x95   : > { %v354_v28 = vadd.f32 %v353_v20, %v3676_v14  ;;  %v3722_v40 = vld [vmem:[#allocation3 + $0x130] sm:$0x1]  ;;  %v365_v41 = vadd.f32 %v364_v31, %v3702_v29  ;;  %v378_v42 = vadd.f32 %v377_v32, %v3704_v30  ;;  %v3729_v45 = vld [vmem:[#allocation3 + $0x100] sm:$0xff]  ;;  %v3731_v46 = vld [vmem:[#allocation3 + $0x108] sm:$0xff] }
  0x96   : > { %v341_v33 = vadd.f32 %v340_v22, %v3678_v15  ;;  %v3733_v47 = vld [vmem:[#allocation3 + $0x138] sm:$0x1]  ;;  %v369_v50 = vsel %vm342_vm0, %v3722_v40, 0.0  ;;  %v3739_v52 = vld [vmem:[#allocation3 + $0x20] sm:$0xff]  ;;  %v3741_v53 = vld [vmem:[#allocation3 + $0x28] sm:$0xff] }
  0x97   : > { %v355_v37 = vadd.f32 %v354_v28, %v3683_v18  ;;  %v366_v49 = vadd.f32 %v365_v41, %v3713_v35  ;;  %v379_v51 = vadd.f32 %v378_v42, %v3715_v36  ;;  %4613 = vst [vmem:[#allocation13_spill] sm:$0xff] %v3741_v53  ;;  %v3743_v54 = vld [vmem:[#allocation3 + $0x50] sm:$0xff]  ;;  %v382_v56 = vsel %vm342_vm0, %v3733_v47, 0.0  ;;  %v3747_v57 = vld [vmem:[#allocation3 + $0x58] sm:$0xff]  ;;  %v3749_v58 = vld [vmem:[#allocation3 + $0x80] sm:$0xff] }
  0x98   : > { %v344_v43 = vadd.f32 %v343_v27, %v341_v33  ;;  %4614 = vst [vmem:[#allocation14_spill] sm:$0xff] %v3747_v57  ;;  %v3751_v59 = vld [vmem:[#allocation3 + $0x88] sm:$0xff]  ;;  %v390_v60 = vadd.f32 %v3743_v54, %v3739_v52  ;;  %v404_v61 = vsel %vm403_vm1, %v3741_v53, 0.0  ;;  %v3759_v8 = vld [vmem:[#allocation3 + $0xb0] sm:$0xff]  ;;  %v3761_v10 = vld [vmem:[#allocation3 + $0xb8] sm:$0xff]  ;;  %v405_v11 = vsel %vm403_vm1, %v3747_v57, 0.0 }
  0x99   : > { %v357_v48 = vadd.f32 %v356_v34, %v355_v37  ;;  %4615 = vst [vmem:[#allocation15_spill] sm:$0xff] %v3751_v59  ;;  %v367_v63 = vadd.f32 %v366_v49, %v3718_v38  ;;  %v380_v6 = vadd.f32 %v379_v51, %v3720_v39  ;;  %4616 = vst [vmem:[#allocation16_spill] sm:$0xff] %v3761_v10  ;;  %v3765_v17 = vld [vmem:[#allocation3 + $0xe8] sm:$0xff]  ;;  %v407_v27 = vsel %vm403_vm1, %v3751_v59, 0.0  ;;  %v3772_v33 = vld [vmem:[#allocation3 + $0xe0] sm:$0xff] }
  0x9a   : > { %v345_v55 = vrot.slane %v344_v43, 4  ;;  %4617 = vst [vmem:[#allocation17_spill] sm:$0xff] %v3765_v17  ;;  %v391_v20 = vadd.f32 %v390_v60, %v3749_v58  ;;  %v406_v22 = vadd.f32 %v405_v11, %v404_v61  ;;  %v3774_v34 = vld [vmem:[#allocation3 + $0x140] sm:$0x1]  ;;  %v409_v37 = vsel %vm403_vm1, %v3761_v10, 0.0  ;;  %v3782_v61 = vld [vmem:[#allocation3 + $0x110] sm:$0xff]  ;;  %vm4216_vm8 = vmor %vm1057_vm4, %vm1056_vm3 }
  0x9b   : > { %v358_v62 = vrot.slane %v357_v48, 4  ;;  %v368_v31 = vadd.f32 %v367_v63, %v3729_v45  ;;  %v381_v32 = vadd.f32 %v380_v6, %v3731_v46  ;;  %4618 = vst [vmem:[#allocation18_spill] sm:$0xff] %v3774_v34  ;;  %v625_v42 = vsub.s32 1, %v3691_v23  ;;  %vm4253_vm9 = vmand %vm342_vm0, %vm1076_vm5 }
  0x9c   : > { %v346_v13 = vadd.f32 %v345_v55, %v344_v43  ;;  %v3779_v43 = vld [vmem:[#allocation3 + $0x118] sm:$0xff]  ;;  %v392_v49 = vadd.f32 %v391_v20, %v3759_v8  ;;  %v408_v51 = vadd.f32 %v407_v27, %v406_v22  ;;  %v395_v11 = vsel %vm342_vm0, %v3774_v34, 0.0  ;;  %v3793_v22 = vld [vmem:[#allocation3 + $0x148] sm:$0x1]  ;;  %vm4260_vm10 = vmand %vm1078_vm6, %vm1079_vm7 }
  0x9d   : > { %v359_v28 = vadd.f32 %v358_v62, %v357_v48  ;;  %4619 = vst [vmem:[#allocation19_spill] sm:$0xff] %v3779_v43  ;;  %v370_v55 = vadd.f32 %v369_v50, %v368_v31  ;;  %v383_v60 = vadd.f32 %v382_v56, %v381_v32  ;;  %v411_v62 = vsel %vm403_vm1, %v3765_v17, 0.0  ;;  %v3791_v56 = vld [vmem:[#allocation7] ss:$2 sm:$0x3f]  ;;  %vm1081_vm11 = vmor %vm4260_vm10, %vm4253_vm9 }
  0x9e   : > { %v347_v41 = vrot.slane %v346_v13, 2  ;;  %v393_v6 = vadd.f32 %v392_v49, %v3772_v33  ;;  %v410_v10 = vadd.f32 %v409_v37, %v408_v51  ;;  %v413_v20 = vsel %vm403_vm1, %v3779_v43, 0.0  ;;  %v3796_v32 = vld [vmem:[#allocation7 + $0x1] ss:$2 sm:$0x3f]  ;;  %vm1089_vm13 = vmand %vm1088_vm12, %vm1079_vm7 }
  0x9f   : > { %v360_v48 = vrot.slane %v359_v28, 2  ;;  %v371_v57 = vrot.slane %v370_v55, 4  ;;  %v384_v53 = vrot.slane %v383_v60, 4  ;;  %v3801_v43 = vrot.slane %v3791_v56, %v625_v42  ;;  %vm1090_vm14 = vmor %vm1089_vm13, %vm4253_vm9 }
  0xa0   : > { %v348_v63 = vadd.f32 %v347_v41, %v346_v13  ;;  %v394_v27 = vadd.f32 %v393_v6, %v3782_v61  ;;  %v412_v13 = vadd.f32 %v411_v62, %v410_v10  ;;  %v416_v17 = vsel %vm415_vm2, %v3793_v22, 0.0 }
  0xa1   : > { %v361_v59 = vadd.f32 %v360_v48, %v359_v28  ;;  %v372_v41 = vadd.f32 %v371_v57, %v370_v55  ;;  %v385_v49 = vadd.f32 %v384_v53, %v383_v60  ;;  %v3807_v10 = vrot.slane %v3796_v32, %v3727_v44 }
  0xa2   : > { %v349_v50 = vrot.slane %v348_v63, 1  ;;  %v396_v28 = vadd.f32 %v395_v11, %v394_v27  ;;  %v414_v51 = vadd.f32 %v413_v20, %v412_v13  ;;  %v3810_v53 = vrot.slane %v3796_v32, %v625_v42 }
  0xa3   : > { %v362_v31 = vrot.slane %v361_v59, 1  ;;  %4620 = vst [vmem:[#allocation20_spill] sm:$0xff] %v3807_v10  ;;  %v373_v55 = vrot.slane %v372_v41, 2  ;;  %v386_v60 = vrot.slane %v385_v49, 2 }
  0xa4   : > { %v350_v37 = vadd.f32 %v349_v50, %v348_v63  ;;  %4621 = vst [vmem:[#allocation21_spill] sm:$0xff] %v3810_v53  ;;  %v397_v20 = vrot.slane %v396_v28, 4  ;;  %v417_v50 = vadd.f32 %v416_v17, %v414_v51 }
  0xa5   : > { %v363_v48 = vadd.f32 %v362_v31, %v361_v59 }
  0xa6   : > { %v425_v6 = vmul.f32 0.020408163, %v350_v37  ;;  %v387_v37 = vadd.f32 %v386_v60, %v385_v49  ;;  %v398_v57 = vadd.f32 %v397_v20, %v396_v28  ;;  %v4632_v20 = vsub.s32 3, %v3691_v23 }
  0xa7   : > { %v426_v59 = vmul.f32 0.020408163, %v363_v48 }
  0xa8   : > { %v3815_v63 = vsub.f32 %v3652_v0, %v425_v6  ;;  %v3818_v11 = vsub.f32 %v3656_v2, %v425_v6  ;;  %v3827_v13 = vsub.f32 %v3660_v4, %v425_v6  ;;  %v3833_v0 = vsub.f32 %v3666_v7, %v425_v6 }
  0xa9   : > { %v3821_v27 = vsub.f32 %v3654_v1, %v426_v59  ;;  %v3824_v42 = vsub.f32 %v3658_v3, %v426_v59  ;;  %v3830_v31 = vsub.f32 %v3662_v5, %v426_v59  ;;  %v3836_v2 = vsub.f32 %v3670_v9, %v426_v59 }
  0xaa   : > { %4622 = vst [vmem:[#allocation22_spill] sm:$0xff] %v3827_v13  ;;  %4624 = vst [vmem:[#allocation24_spill] sm:$0xff] %v3833_v0  ;;  %v3839_v17 = vsub.f32 %v3673_v12, %v425_v6  ;;  %v3842_v1 = vsub.f32 %v3676_v14, %v426_v59  ;;  %v473_v3 = vmul.f32 %v3815_v63, %v3815_v63  ;;  %v388_v60 = vrot.slane %v387_v37, 1 }
  0xab   : > { %4623 = vst [vmem:[#allocation23_spill] sm:$0xff] %v3830_v31  ;;  %4625 = vst [vmem:[#allocation25_spill] sm:$0xff] %v3836_v2  ;;  %v474_v4 = vmul.f32 %v3821_v27, %v3821_v27  ;;  %v374_v5 = vadd.f32 %v373_v55, %v372_v41  ;;  %v3849_v7 = vsub.f32 %v3680_v16, %v425_v6 }
  0xac   : > { %4626 = vst [vmem:[#allocation26_spill] sm:$0xff] %v3839_v17  ;;  %4627 = vst [vmem:[#allocation27_spill] sm:$0xff] %v3842_v1  ;;  %v3852_v9 = vsub.f32 %v3685_v19, %v426_v59  ;;  %v479_v12 = vmul.f32 %v3818_v11, %v3818_v11  ;;  %v480_v14 = vmul.f32 %v3824_v42, %v3824_v42 }
  0xad   : > { %4628 = vst [vmem:[#allocation28_spill] sm:$0xff] %v3849_v7  ;;  %v3859_v51 = vsub.f32 %v3678_v15, %v425_v6  ;;  %v3862_v48 = vsub.f32 %v3683_v18, %v426_v59  ;;  %v485_v41 = vmul.f32 %v3827_v13, %v3827_v13  ;;  %v486_v16 = vmul.f32 %v3830_v31, %v3830_v31 }
  0xae   : > { %4629 = vst [vmem:[#allocation29_spill] sm:$0xff] %v3852_v9  ;;  %v491_v19 = vmul.f32 %v3833_v0, %v3833_v0  ;;  %v492_v49 = vmul.f32 %v3836_v2, %v3836_v2  ;;  %v497_v55 = vmul.f32 %v3839_v17, %v3839_v17  ;;  %v498_v15 = vmul.f32 %v3842_v1, %v3842_v1 }
  0xaf   : > { %4630 = vst [vmem:[#allocation30_spill] sm:$0xff] %v3862_v48  ;;  %v515_v18 = vadd.f32 %v479_v12, %v473_v3  ;;  %v528_v6 = vadd.f32 %v480_v14, %v474_v4  ;;  %v375_v59 = vrot.slane %v374_v5, 1  ;;  %v509_v34 = vmul.f32 %v3849_v7, %v3849_v7 }
  0xb0   : > { %v510_v62 = vmul.f32 %v3852_v9, %v3852_v9  ;;  %v418_v0 = vrot.slane %v417_v50, 4  ;;  %v389_v13 = vadd.f32 %v388_v60, %v387_v37  ;;  %v503_v17 = vmul.f32 %v3859_v51, %v3859_v51 }
  0xb1   : > { %v516_v31 = vadd.f32 %v515_v18, %v485_v41  ;;  %v529_v2 = vadd.f32 %v528_v6, %v486_v16  ;;  %v376_v53 = vadd.f32 %v375_v59, %v374_v5  ;;  %v504_v3 = vmul.f32 %v3862_v48, %v3862_v48 }
  0xb2   : > { %v399_v4 = vrot.slane %v398_v57, 2  ;;  %v419_v12 = vadd.f32 %v418_v0, %v417_v50  ;;  %v428_v10 = vmul.f32 0.020408163, %v389_v13  ;;  %v4631_v9 = vsub.s32 2, %v3691_v23 }
  0xb3   : > { %v517_v14 = vadd.f32 %v516_v31, %v491_v19  ;;  %v530_v1 = vadd.f32 %v529_v2, %v492_v49  ;;  %v427_v7 = vmul.f32 0.020408163, %v376_v53  ;;  %v3892_v5 = vrot.slane %v3791_v56, %v4632_v20 }
  0xb4   : > { %v3887_v28 = vrot.slane %v3791_v56, %v4631_v9  ;;  %v520_v50 = vsel %vm342_vm0, %v509_v34, 0.0  ;;  %v533_v53 = vsel %vm342_vm0, %v510_v62, 0.0  ;;  %v3902_v0 = vsub.f32 %v3693_v24, %v428_v10 }
  0xb5   : > { %v518_v16 = vadd.f32 %v517_v14, %v497_v55  ;;  %v531_v31 = vadd.f32 %v530_v1, %v498_v15  ;;  %v3899_v13 = vsub.f32 %v3688_v21, %v427_v7  ;;  %v3905_v2 = vsub.f32 %v3695_v25, %v427_v7 }
  0xb6   : > { %v3908_v9 = vsub.f32 %v3697_v26, %v428_v10  ;;  %v400_v55 = vadd.f32 %v399_v4, %v398_v57  ;;  %v420_v18 = vrot.slane %v419_v12, 2  ;;  %v3911_v34 = vsub.f32 %v3702_v29, %v427_v7 }
  0xb7   : > { %v519_v19 = vadd.f32 %v518_v16, %v503_v17  ;;  %v532_v49 = vadd.f32 %v531_v31, %v504_v3  ;;  %v3914_v62 = vsub.f32 %v3704_v30, %v428_v10  ;;  %v3917_v21 = vsub.f32 %v3713_v35, %v427_v7 }
  0xb8   : > { %v3920_v24 = vsub.f32 %v3715_v36, %v428_v10  ;;  %v3923_v26 = vsub.f32 %v3718_v38, %v427_v7  ;;  %v3926_v57 = vsub.f32 %v3720_v39, %v428_v10  ;;  %v475_v29 = vmul.f32 %v3899_v13, %v3899_v13 }
  0xb9   : > { %v521_v25 = vadd.f32 %v520_v50, %v519_v19  ;;  %v534_v1 = vadd.f32 %v533_v53, %v532_v49  ;;  %v476_v30 = vmul.f32 %v3902_v0, %v3902_v0  ;;  %v481_v35 = vmul.f32 %v3905_v2, %v3905_v2 }
  0xba   : > { %v482_v36 = vmul.f32 %v3908_v9, %v3908_v9  ;;  %v3937_v38 = vsub.f32 %v3729_v45, %v427_v7  ;;  %v3940_v39 = vsub.f32 %v3731_v46, %v428_v10  ;;  %v3943_v6 = vsub.f32 %v3722_v40, %v427_v7 }
  0xbb   : > { %v522_v17 = vrot.slane %v521_v25, 4  ;;  %v535_v15 = vrot.slane %v534_v1, 4  ;;  %v3946_v59 = vsub.f32 %v3733_v47, %v428_v10  ;;  %v487_v60 = vmul.f32 %v3911_v34, %v3911_v34 }
  0xbc   : > { %4633 = vst [vmem:[#allocation31_spill] sm:$0xff] %v3943_v6  ;;  %v488_v3 = vmul.f32 %v3914_v62, %v3914_v62  ;;  %v493_v45 = vmul.f32 %v3917_v21, %v3917_v21  ;;  %v494_v46 = vmul.f32 %v3920_v24, %v3920_v24  ;;  %v499_v40 = vmul.f32 %v3923_v26, %v3923_v26 }
  0xbd   : > { %4634 = vst [vmem:[#allocation32_spill] sm:$0xff] %v3946_v59  ;;  %v523_v4 = vadd.f32 %v522_v17, %v521_v25  ;;  %v536_v14 = vadd.f32 %v535_v15, %v534_v1  ;;  %v500_v47 = vmul.f32 %v3926_v57, %v3926_v57  ;;  %v541_v10 = vadd.f32 %v481_v35, %v475_v29 }
  0xbe   : > { %v554_v7 = vadd.f32 %v482_v36, %v476_v30  ;;  %v401_v50 = vrot.slane %v400_v55, 1  ;;  %v421_v31 = vadd.f32 %v420_v18, %v419_v12  ;;  %v511_v53 = vmul.f32 %v3943_v6, %v3943_v6 }
  0xbf   : > { %v524_v20 = vrot.slane %v523_v4, 2  ;;  %v537_v16 = vrot.slane %v536_v14, 2  ;;  %v512_v19 = vmul.f32 %v3946_v59, %v3946_v59  ;;  %v542_v49 = vadd.f32 %v541_v10, %v487_v60 }
  0xc0   : > { %v555_v25 = vadd.f32 %v554_v7, %v488_v3  ;;  %v402_v15 = vadd.f32 %v401_v50, %v400_v55  ;;  %v422_v41 = vrot.slane %v421_v31, 1  ;;  %v505_v29 = vmul.f32 %v3937_v38, %v3937_v38 }
  0xc1   : > { %v525_v1 = vadd.f32 %v524_v20, %v523_v4  ;;  %v538_v17 = vadd.f32 %v537_v16, %v536_v14  ;;  %v506_v30 = vmul.f32 %v3940_v39, %v3940_v39  ;;  %v543_v35 = vadd.f32 %v542_v49, %v493_v45 }
  0xc2   : > { %v556_v12 = vadd.f32 %v555_v25, %v494_v46  ;;  %v423_v37 = vadd.f32 %v422_v41, %v421_v31  ;;  %v429_v6 = vmul.f32 0.020408163, %v402_v15  ;;  %v546_v60 = vsel %vm342_vm0, %v511_v53, 0.0 }
  0xc3   : > { %v526_v18 = vrot.slane %v525_v1, 1  ;;  %v539_v36 = vrot.slane %v538_v17, 1  ;;  %v544_v48 = vadd.f32 %v543_v35, %v499_v40  ;;  %v4635_v4 = vsub.s32 2, %v3691_v23 }
  0xc4   : > { %v557_v3 = vadd.f32 %v556_v12, %v500_v47  ;;  %v559_v7 = vsel %vm342_vm0, %v512_v19, 0.0  ;;  %v430_v20 = vmul.f32 0.020408163, %v423_v37  ;;  %v4636_v16 = vsub.s32 3, %v3691_v23 }
  0xc5   : > { %v3972_v55 = vrot.slane %v3796_v32, %v4635_v4  ;;  %v527_v14 = vadd.f32 %v526_v18, %v525_v1  ;;  %v540_v10 = vadd.f32 %v539_v36, %v538_v17  ;;  %v545_v45 = vadd.f32 %v544_v48, %v505_v29  ;;  %v4639_v29 = vld [vmem:[#allocation13_spill] sm:$0xff]  ;;  %v4641_v36 = vld [vmem:[#allocation15_spill] sm:$0xff] }
  0xc6   : > { %v558_v46 = vadd.f32 %v557_v3, %v506_v30  ;;  %v3978_v41 = vrot.slane %v3796_v32, %v4636_v16  ;;  %v4637_v40 = vsub.s32 4, %v3691_v23  ;;  %v3986_v53 = vsub.f32 %v3739_v52, %v429_v6  ;;  %v4640_v52 = vld [vmem:[#allocation14_spill] sm:$0xff] }
  0xc7   : > { %v599_v50 = vmul.f32 0.020408163, %v527_v14  ;;  %v600_v31 = vmul.f32 0.020408163, %v540_v10  ;;  %v4638_v19 = vsub.s32 5, %v3691_v23  ;;  %v547_v37 = vadd.f32 %v546_v60, %v545_v45  ;;  %v4645_v14 = vld [vmem:[#allocation17_spill] sm:$0xff] }
  0xc8   : > { %v3983_v47 = vrot.slane %v3791_v56, %v4637_v40  ;;  %v560_v49 = vadd.f32 %v559_v7, %v558_v46  ;;  %v3994_v25 = vsub.f32 %v3743_v54, %v429_v6  ;;  %v3997_v1 = vsub.f32 %v3749_v58, %v429_v6  ;;  %v4642_v54 = vld [vmem:[#allocation16_spill] sm:$0xff] }
  0xc9   : > { %v3991_v48 = vrot.slane %v3791_v56, %v4638_v19  ;;  %v605_v17 = vadd.f32 1e-05, %v599_v50  ;;  %v606_v15 = vadd.f32 1e-05, %v600_v31  ;;  %v4000_v30 = vsub.f32 %v4639_v29, %v430_v20  ;;  %v4648_v19 = vld [vmem:[#allocation19_spill] sm:$0xff] }
  0xca   : > { %v4003_v35 = vsub.f32 %v4640_v52, %v430_v20  ;;  %v548_v12 = vrot.slane %v547_v37, 4  ;;  %v561_v18 = vrot.slane %v560_v49, 4  ;;  %v4006_v3 = vsub.f32 %v4641_v36, %v430_v20 }
  0xcb   : > { %v4009_v60 = vsub.f32 %v3759_v8, %v429_v6  ;;  %3038 = vrsqrt.f32 %v605_v17  ;;  %v4012_v58 = vsub.f32 %v4642_v54, %v430_v20  ;;  %v4015_v4 = vsub.f32 %v3772_v33, %v429_v6 }
  0xcc   : > { %v4018_v10 = vsub.f32 %v4645_v14, %v430_v20  ;;  %3040 = vrsqrt.f32 %v606_v15  ;;  %v549_v7 = vadd.f32 %v548_v12, %v547_v37  ;;  %v562_v45 = vadd.f32 %v561_v18, %v560_v49  ;;  %v4650_v49 = vld [vmem:[#allocation18_spill] sm:$0xff] }
  0xcd   : > { %4643 = vst [vmem:[#allocation13_spill] sm:$0xff] %v4012_v58  ;;  %4644 = vst [vmem:[#allocation14_spill] sm:$0xff] %v4015_v4  ;;  %v4021_v46 = vsub.f32 %v3782_v61, %v429_v6  ;;  %v477_v8 = vmul.f32 %v3986_v53, %v3986_v53  ;;  %v478_v16 = vmul.f32 %v4000_v30, %v4000_v30 }
  0xce   : > { %4646 = vst [vmem:[#allocation15_spill] sm:$0xff] %v4018_v10  ;;  %v483_v40 = vmul.f32 %v3994_v25, %v3994_v25  ;;  %v484_v33 = vmul.f32 %v4003_v35, %v4003_v35  ;;  %v550_v50 = vrot.slane %v549_v7, 2  ;;  %v563_v31 = vrot.slane %v562_v45, 2 }
  0xcf   : > { %4647 = vst [vmem:[#allocation16_spill] sm:$0xff] %v4021_v46  ;;  %v4032_v37 = vsub.f32 %v4648_v19, %v430_v20  ;;  %v4035_v61 = vsub.f32 %v4650_v49, %v429_v6  ;;  %v4038_v17 = vsub.f32 %v3793_v22, %v430_v20  ;;  %v489_v15 = vmul.f32 %v3997_v1, %v3997_v1 }
  0xd0   : > { %v490_v29 = vmul.f32 %v4006_v3, %v4006_v3  ;;  %v496_v52 = vmul.f32 %v4012_v58, %v4012_v58  ;;  %v551_v12 = vadd.f32 %v550_v50, %v549_v7  ;;  %v564_v18 = vadd.f32 %v563_v31, %v562_v45 }
  0xd1   : > { %4649 = vst [vmem:[#allocation17_spill] sm:$0xff] %v4032_v37  ;;  %4651 = vst [vmem:[#allocation19_spill] sm:$0xff] %v4035_v61  ;;  %v495_v36 = vmul.f32 %v4009_v60, %v4009_v60  ;;  %v501_v6 = vmul.f32 %v4015_v4, %v4015_v4  ;;  %v502_v22 = vmul.f32 %v4018_v10, %v4018_v10  ;;  %v580_v54 = vsel %vm403_vm1, %v478_v16, 0.0 }
  0xd2   : > { %4652 = vst [vmem:[#allocation18_spill] sm:$0xff] %v4038_v17  ;;  %v567_v20 = vadd.f32 %v483_v40, %v477_v8  ;;  %v581_v14 = vsel %vm403_vm1, %v484_v33, 0.0  ;;  %v552_v19 = vrot.slane %v551_v12, 1  ;;  %v565_v49 = vrot.slane %v564_v18, 1 }
  0xd3   : > { %v508_v7 = vmul.f32 %v4032_v37, %v4032_v37  ;;  %v582_v45 = vadd.f32 %v581_v14, %v580_v54  ;;  %v513_v50 = vmul.f32 %v4035_v61, %v4035_v61  ;;  %v583_v59 = vsel %vm403_vm1, %v490_v29, 0.0 }
  0xd4   : > { %v568_v31 = vadd.f32 %v567_v20, %v489_v15  ;;  %v585_v4 = vsel %vm403_vm1, %v496_v52, 0.0  ;;  %v553_v10 = vadd.f32 %v552_v19, %v551_v12  ;;  %v566_v8 = vadd.f32 %v565_v49, %v564_v18 }
  0xd5   : > { %v584_v40 = vadd.f32 %v583_v59, %v582_v45  ;;  %v4653_v16 = vsub.s32 4, %v3691_v23  ;;  %v3039_v58 = vpop.eup %3038  ;;  %v507_v54 = vmul.f32 %v4021_v46, %v4021_v46  ;;  %v514_v14 = vmul.f32 %v4038_v17, %v4038_v17 }
  0xd6   : > { %v569_v15 = vadd.f32 %v568_v31, %v495_v36  ;;  %v587_v29 = vsel %vm403_vm1, %v502_v22, 0.0  ;;  %v3041_v20 = vpop.eup %3040  ;;  %v4654_v52 = vrot.slane %v3791_v56, %v3727_v44  ;;  %v601_v12 = vmul.f32 0.020408163, %v553_v10 }
  0xd7   : > { %v4063_v33 = vrot.slane %v3796_v32, %v4653_v16  ;;  %v602_v18 = vmul.f32 0.020408163, %v566_v8  ;;  %v586_v19 = vadd.f32 %v585_v4, %v584_v40  ;;  %v650_v49 = vmul.f32 %v3041_v20, %v3801_v43  ;;  %v796_v8 = vld [vmem:[#allocation5] sm:$0xff] }
  0xd8   : > { %v649_v59 = vmul.f32 %v3039_v58, %v4654_v52  ;;  %v570_v45 = vadd.f32 %v569_v15, %v501_v6  ;;  %v572_v16 = vsel %vm342_vm0, %v513_v50, 0.0  ;;  %v589_v61 = vsel %vm403_vm1, %v508_v7, 0.0  ;;  %v797_v15 = vld [vmem:[#allocation5 + $0x8] sm:$0xff]  ;;  %v4659_v52 = vld [vmem:[#allocation21_spill] sm:$0xff] }
  0xd9   : > { %v607_v36 = vadd.f32 1e-05, %v601_v12  ;;  %v608_v22 = vadd.f32 1e-05, %v602_v18  ;;  %v588_v31 = vadd.f32 %v587_v29, %v586_v19  ;;  %v4080_v37 = vrot.slane %v650_v49, %v3727_v44  ;;  %v4658_v20 = vld [vmem:[#allocation22_spill] sm:$0xff]  ;;  %v4660_v18 = vld [vmem:[#allocation23_spill] sm:$0xff] }
  0xda   : > { %v4077_v17 = vrot.slane %v649_v59, %v3727_v44  ;;  %v571_v56 = vadd.f32 %v570_v45, %v507_v54  ;;  %v591_v58 = vsel %vm415_vm2, %v514_v14, 0.0  ;;  %v4655_v4 = vsub.s32 5, %v3691_v23  ;;  %v802_v54 = vld [vmem:[#allocation5 + $0x30] sm:$0xff] }
  0xdb   : > { %3042 = vrsqrt.f32 %v607_v36  ;;  %v590_v6 = vadd.f32 %v589_v61, %v588_v31  ;;  %v680_v50 = vmul.f32 %v4080_v37, %v3821_v27  ;;  %v686_v23 = vmul.f32 %v4080_v37, %v3824_v42  ;;  %v803_v61 = vld [vmem:[#allocation5 + $0x38] sm:$0xff]  ;;  %v808_v42 = vld [vmem:[#allocation5 + $0x60] sm:$0xff] }
  0xdc   : > { %v4086_v43 = vrot.slane %v3796_v32, %v4655_v4  ;;  %v679_v10 = vmul.f32 %v4077_v17, %v3815_v63  ;;  %v685_v7 = vmul.f32 %v4077_v17, %v3818_v11  ;;  %3044 = vrsqrt.f32 %v608_v22  ;;  %v4657_v32 = vld [vmem:[#allocation20_spill] sm:$0xff]  ;;  %v809_v22 = vld [vmem:[#allocation5 + $0x68] sm:$0xff] }
  0xdd   : > { %v573_v40 = vadd.f32 %v572_v16, %v571_v56  ;;  %v592_v29 = vadd.f32 %v591_v58, %v590_v6  ;;  %v691_v11 = vmul.f32 %v4077_v17, %v4658_v20  ;;  %v755_v59 = vadd.f32 %v4659_v52, %v680_v50 }
  0xde   : > { %4656 = vst [vmem:[#allocation33_spill] sm:$0xff] %v4086_v43  ;;  %v754_v14 = vadd.f32 %v4657_v32, %v679_v10  ;;  %v760_v63 = vadd.f32 %v4657_v32, %v685_v7  ;;  %v761_v12 = vadd.f32 %v4659_v52, %v686_v23  ;;  %v692_v19 = vmul.f32 %v4080_v37, %v4660_v18 }
  0xdf   : > { %v574_v27 = vrot.slane %v573_v40, 4  ;;  %v593_v45 = vrot.slane %v592_v29, 4  ;;  %v766_v36 = vadd.f32 %v4657_v32, %v691_v11  ;;  %v839_v31 = vadd.f32 %v797_v15, %v755_v59 }
  0xe0   : > { %v838_v49 = vadd.f32 %v796_v8, %v754_v14  ;;  %v844_v16 = vadd.f32 %v802_v54, %v760_v63  ;;  %v845_v58 = vadd.f32 %v803_v61, %v761_v12  ;;  %v767_v4 = vadd.f32 %v4659_v52, %v692_v19  ;;  %v4661_v14 = vld [vmem:[#allocation24_spill] sm:$0xff]  ;;  %v4662_v63 = vld [vmem:[#allocation25_spill] sm:$0xff] }
  0xe1   : > { %v575_v56 = vadd.f32 %v574_v27, %v573_v40  ;;  %v594_v6 = vadd.f32 %v593_v45, %v592_v29  ;;  %v850_v50 = vadd.f32 %v808_v42, %v766_v36  ;;  %v881_v23 = vmax.f32 %v839_v31, 0.0  ;;  %v814_v27 = vld [vmem:[#allocation5 + $0x90] sm:$0xff]  ;;  %v815_v29 = vld [vmem:[#allocation5 + $0x98] sm:$0xff]  ;;  %v4663_v45 = vld [vmem:[#allocation26_spill] sm:$0xff] }
  0xe2   : > { %v880_v10 = vmax.f32 %v838_v49, 0.0  ;;  %v886_v7 = vmax.f32 %v844_v16, 0.0  ;;  %v887_v46 = vmax.f32 %v845_v58, 0.0  ;;  %v851_v18 = vadd.f32 %v809_v22, %v767_v4 }
  0xe3   : > { %v576_v20 = vrot.slane %v575_v56, 2  ;;  %v595_v43 = vrot.slane %v594_v6, 2  ;;  %v892_v8 = vmax.f32 %v850_v50, 0.0  ;;  %v697_v54 = vmul.f32 %v4077_v17, %v4661_v14 }
  0xe4   : > { %v698_v15 = vmul.f32 %v4080_v37, %v4662_v63  ;;  %v2812_v40 = vpack.c.bf16 %v881_v23, %v880_v10  ;;  %v2815_v11 = vpack.c.bf16 %v887_v46, %v886_v7  ;;  %v893_v59 = vmax.f32 %v851_v18, 0.0  ;;  %v4664_v46 = vld [vmem:[#allocation27_spill] sm:$0xff] }
  0xe5   : > { %v577_v61 = vadd.f32 %v576_v20, %v575_v56  ;;  %v3043_v12 = vpop.eup %3042  ;;  %v596_v19 = vadd.f32 %v595_v43, %v594_v6  ;;  %v772_v42 = vadd.f32 %v4657_v32, %v697_v54  ;;  %v703_v16 = vmul.f32 %v4077_v17, %v4663_v45 }
  0xe6   : > { %v773_v49 = vadd.f32 %v4659_v52, %v698_v15  ;;  %v3045_v36 = vpop.eup %3044  ;;  %1054 = vst [vmem:[#allocation2] sm:$0xff] %v2812_v40  ;;  %v651_v22 = vmul.f32 %v3043_v12, %v3887_v28  ;;  %1060 = vst [vmem:[#allocation2 + $0x18] sm:$0xff] %v2815_v11  ;;  %v2818_v56 = vpack.c.bf16 %v893_v59, %v892_v8 }
  0xe7   : > { %v578_v31 = vrot.slane %v577_v61, 1  ;;  %v704_v58 = vmul.f32 %v4080_v37, %v4664_v46  ;;  %v652_v4 = vmul.f32 %v3045_v36, %v3892_v5  ;;  %v597_v43 = vrot.slane %v596_v19, 1 }
  0xe8   : > { %v856_v10 = vadd.f32 %v814_v27, %v772_v42  ;;  %v857_v6 = vadd.f32 %v815_v29, %v773_v49  ;;  %v4119_v7 = vrot.slane %v651_v22, %v3727_v44  ;;  %1063 = vst [vmem:[#allocation2 + $0x30] sm:$0xff] %v2818_v56  ;;  %v778_v23 = vadd.f32 %v4657_v32, %v703_v16  ;;  %v804_v27 = vld [vmem:[#allocation5 + $0x40] sm:$0xff] }
  0xe9   : > { %v579_v50 = vadd.f32 %v578_v31, %v577_v61  ;;  %v779_v28 = vadd.f32 %v4659_v52, %v704_v58  ;;  %v4124_v20 = vrot.slane %v652_v4, %v3727_v44  ;;  %v598_v18 = vadd.f32 %v597_v43, %v596_v19  ;;  %v798_v61 = vld [vmem:[#allocation5 + $0x10] sm:$0xff]  ;;  %v799_v19 = vld [vmem:[#allocation5 + $0x18] sm:$0xff]  ;;  %v820_v4 = vld [vmem:[#allocation5 + $0xc0] sm:$0xff] }
  0xea   : > { %v898_v8 = vmax.f32 %v856_v10, 0.0  ;;  %v899_v14 = vmax.f32 %v857_v6, 0.0  ;;  %v681_v5 = vmul.f32 %v4119_v7, %v3899_v13  ;;  %v687_v63 = vmul.f32 %v4119_v7, %v3905_v2  ;;  %v810_v13 = vld [vmem:[#allocation5 + $0x70] sm:$0xff]  ;;  %v821_v43 = vld [vmem:[#allocation5 + $0xc8] sm:$0xff] }
  0xeb   : > { %v603_v54 = vmul.f32 0.020408163, %v579_v50  ;;  %v693_v15 = vmul.f32 %v4119_v7, %v3911_v34  ;;  %v682_v40 = vmul.f32 %v4124_v20, %v3902_v0  ;;  %v604_v11 = vmul.f32 0.020408163, %v598_v18  ;;  %v805_v34 = vld [vmem:[#allocation5 + $0x48] sm:$0xff]  ;;  %v811_v0 = vld [vmem:[#allocation5 + $0x78] sm:$0xff] }
  0xec   : > { %v688_v59 = vmul.f32 %v4124_v20, %v3908_v9  ;;  %v694_v29 = vmul.f32 %v4124_v20, %v3914_v62  ;;  %v756_v12 = vadd.f32 %v3972_v55, %v681_v5  ;;  %v762_v42 = vadd.f32 %v3972_v55, %v687_v63 }
  0xed   : > { %v609_v2 = vadd.f32 1e-05, %v603_v54  ;;  %v768_v49 = vadd.f32 %v3972_v55, %v693_v15  ;;  %v757_v45 = vadd.f32 %v3978_v41, %v682_v40  ;;  %v610_v16 = vadd.f32 1e-05, %v604_v11 }
  0xee   : > { %v763_v9 = vadd.f32 %v3978_v41, %v688_v59  ;;  %v769_v36 = vadd.f32 %v3978_v41, %v694_v29  ;;  %v840_v22 = vadd.f32 %v798_v61, %v756_v12  ;;  %v846_v62 = vadd.f32 %v804_v27, %v762_v42  ;;  %v816_v61 = vld [vmem:[#allocation5 + $0xa0] sm:$0xff] }
  0xef   : > { %3046 = vrsqrt.f32 %v609_v2  ;;  %v852_v31 = vadd.f32 %v810_v13, %v768_v49  ;;  %v841_v56 = vadd.f32 %v799_v19, %v757_v45  ;;  %v2821_v18 = vpack.c.bf16 %v899_v14, %v898_v8  ;;  %v817_v14 = vld [vmem:[#allocation5 + $0xa8] sm:$0xff] }
  0xf0   : > { %3048 = vrsqrt.f32 %v610_v16  ;;  %v847_v46 = vadd.f32 %v805_v34, %v763_v9  ;;  %v853_v58 = vadd.f32 %v811_v0, %v769_v36  ;;  %v882_v10 = vmax.f32 %v840_v22, 0.0  ;;  %v4665_v49 = vld [vmem:[#allocation30_spill] sm:$0xff]  ;;  %v826_v36 = vld [vmem:[#allocation5 + $0xf0] sm:$0xff] }
  0xf1   : > { %v888_v6 = vmax.f32 %v846_v62, 0.0  ;;  %v894_v50 = vmax.f32 %v852_v31, 0.0  ;;  %v883_v5 = vmax.f32 %v841_v56, 0.0  ;;  %v699_v15 = vmul.f32 %v4119_v7, %v3917_v21  ;;  %1066 = vst [vmem:[#allocation2 + $0x48] sm:$0xff] %v2821_v18 }
  0xf2   : > { %v889_v54 = vmax.f32 %v847_v46, 0.0  ;;  %v895_v63 = vmax.f32 %v853_v58, 0.0  ;;  %v700_v40 = vmul.f32 %v4124_v20, %v3920_v24  ;;  %v862_v11 = vadd.f32 %v820_v4, %v778_v23  ;;  %v822_v24 = vld [vmem:[#allocation5 + $0xd0] sm:$0xff] }
  0xf3   : > { %v863_v59 = vadd.f32 %v821_v43, %v779_v28  ;;  %v705_v27 = vmul.f32 %v4119_v7, %v3923_v26  ;;  %v2813_v29 = vpack.c.bf16 %v883_v5, %v882_v10  ;;  %v774_v8 = vadd.f32 %v3972_v55, %v699_v15  ;;  %v823_v28 = vld [vmem:[#allocation5 + $0xd8] sm:$0xff] }
  0xf4   : > { %v2816_v13 = vpack.c.bf16 %v889_v54, %v888_v6  ;;  %v2819_v12 = vpack.c.bf16 %v895_v63, %v894_v50  ;;  %v775_v19 = vadd.f32 %v3978_v41, %v700_v40  ;;  %v904_v2 = vmax.f32 %v862_v11, 0.0  ;;  %v828_v6 = vld [vmem:[#allocation5 + $0x100] sm:$0xff]  ;;  %v829_v63 = vld [vmem:[#allocation5 + $0x108] sm:$0xff] }
  0xf5   : > { %v905_v21 = vmax.f32 %v863_v59, 0.0  ;;  %v706_v42 = vmul.f32 %v4124_v20, %v3926_v57  ;;  %1055 = vst [vmem:[#allocation2 + $0x8] sm:$0xff] %v2813_v29  ;;  %v858_v23 = vadd.f32 %v816_v61, %v774_v8  ;;  %v780_v26 = vadd.f32 %v3972_v55, %v705_v27  ;;  %v827_v57 = vld [vmem:[#allocation5 + $0xf8] sm:$0xff] }
  0xf6   : > { %1061 = vst [vmem:[#allocation2 + $0x20] sm:$0xff] %v2816_v13  ;;  %1064 = vst [vmem:[#allocation2 + $0x38] sm:$0xff] %v2819_v12  ;;  %v709_v34 = vmul.f32 %v4077_v17, %v3859_v51  ;;  %v710_v0 = vmul.f32 %v4080_v37, %v4665_v49  ;;  %v859_v45 = vadd.f32 %v817_v14, %v775_v19  ;;  %v4666_v12 = vld [vmem:[#allocation28_spill] sm:$0xff]  ;;  %v800_v19 = vld [vmem:[#allocation5 + $0x20] sm:$0xff] }
  0xf7   : > { %v2824_v16 = vpack.c.bf16 %v905_v21, %v904_v2  ;;  %v781_v9 = vadd.f32 %v3978_v41, %v706_v42  ;;  %v711_v22 = vmul.f32 %v4119_v7, %v3937_v38  ;;  %v900_v62 = vmax.f32 %v858_v23, 0.0  ;;  %v801_v2 = vld [vmem:[#allocation5 + $0x28] sm:$0xff]  ;;  %v806_v23 = vld [vmem:[#allocation5 + $0x50] sm:$0xff]  ;;  %v807_v49 = vld [vmem:[#allocation5 + $0x58] sm:$0xff] }
  0xf8   : > { %v864_v31 = vadd.f32 %v822_v24, %v780_v26  ;;  %v784_v56 = vadd.f32 %v4657_v32, %v709_v34  ;;  %v785_v46 = vadd.f32 %v4659_v52, %v710_v0  ;;  %v901_v51 = vmax.f32 %v859_v45, 0.0  ;;  %v812_v26 = vld [vmem:[#allocation5 + $0x80] sm:$0xff]  ;;  %v818_v34 = vld [vmem:[#allocation5 + $0xb0] sm:$0xff]  ;;  %v813_v0 = vld [vmem:[#allocation5 + $0x88] sm:$0xff] }
  0xf9   : > { %v3047_v58 = vpop.eup %3046  ;;  %1069 = vst [vmem:[#allocation2 + $0x60] sm:$0xff] %v2824_v16  ;;  %v865_v4 = vadd.f32 %v823_v28, %v781_v9  ;;  %v712_v43 = vmul.f32 %v4124_v20, %v3940_v39  ;;  %v786_v10 = vadd.f32 %v3972_v55, %v711_v22  ;;  %v4188_v8 = vmul.f32 %v4077_v17, %v4666_v12  ;;  %v4667_v28 = vld [vmem:[#allocation13_spill] sm:$0xff] }
  0xfa   : > { %v3049_v50 = vpop.eup %3048  ;;  %v653_v18 = vmul.f32 %v3047_v58, %v3983_v47  ;;  %v906_v38 = vmax.f32 %v864_v31, 0.0  ;;  %v4168_v5 = vadd.f32 %v826_v36, %v784_v56  ;;  %v4170_v54 = vadd.f32 %v827_v57, %v785_v46  ;;  %v819_v45 = vld [vmem:[#allocation5 + $0xb8] sm:$0xff] }
  0xfb   : > { %v654_v15 = vmul.f32 %v3049_v50, %v3991_v48  ;;  %v2822_v40 = vpack.c.bf16 %v901_v51, %v900_v62  ;;  %v907_v61 = vmax.f32 %v865_v4, 0.0  ;;  %v787_v39 = vadd.f32 %v3978_v41, %v712_v43  ;;  %v4668_v16 = vld [vmem:[#allocation33_spill] sm:$0xff] }
  0xfc   : > { %v4175_v11 = vrot.slane %v653_v18, %v3727_v44  ;;  %v910_v59 = vmax.f32 %v4168_v5, 0.0  ;;  %v911_v47 = vmax.f32 %v4170_v54, 0.0  ;;  %v4179_v27 = vadd.f32 %v828_v6, %v786_v10 }
  0xfd   : > { %v4182_v29 = vrot.slane %v654_v15, %v3727_v44  ;;  %1067 = vst [vmem:[#allocation2 + $0x50] sm:$0xff] %v2822_v40  ;;  %v2825_v48 = vpack.c.bf16 %v907_v61, %v906_v38  ;;  %v4184_v13 = vadd.f32 %v829_v63, %v787_v39  ;;  %v4671_v15 = vld [vmem:[#allocation14_spill] sm:$0xff]  ;;  %v4672_v61 = vld [vmem:[#allocation15_spill] sm:$0xff] }
  0xfe   : > { %v683_v14 = vmul.f32 %v4175_v11, %v3986_v53  ;;  %v689_v21 = vmul.f32 %v4175_v11, %v3994_v25  ;;  %v695_v44 = vmul.f32 %v4175_v11, %v3997_v1  ;;  %v701_v42 = vmul.f32 %v4175_v11, %v4009_v60 }
  0xff   : > { %v684_v24 = vmul.f32 %v4182_v29, %v4000_v30  ;;  %v690_v17 = vmul.f32 %v4182_v29, %v4003_v35  ;;  %v696_v53 = vmul.f32 %v4182_v29, %v4006_v3  ;;  %v702_v25 = vmul.f32 %v4182_v29, %v4667_v28  ;;  %1070 = vst [vmem:[#allocation2 + $0x68] sm:$0xff] %v2825_v48  ;;  %v832_v28 = vld [vmem:[#allocation5 + $0x120] sm:$0x1] }
 0x100   : > { %v758_v1 = vadd.f32 %v4063_v33, %v683_v14  ;;  %v764_v60 = vadd.f32 %v4063_v33, %v689_v21  ;;  %v770_v30 = vadd.f32 %v4063_v33, %v695_v44  ;;  %v776_v35 = vadd.f32 %v4063_v33, %v701_v42  ;;  %v824_v44 = vld [vmem:[#allocation5 + $0xe0] sm:$0xff]  ;;  %v825_v42 = vld [vmem:[#allocation5 + $0xe8] sm:$0xff] }
 0x101   : > { %v759_v9 = vadd.f32 %v4668_v16, %v684_v24  ;;  %v765_v3 = vadd.f32 %v4668_v16, %v690_v17  ;;  %v771_v36 = vadd.f32 %v4668_v16, %v696_v53  ;;  %v777_v57 = vadd.f32 %v4668_v16, %v702_v25  ;;  %v4673_v53 = vld [vmem:[#allocation16_spill] sm:$0xff] }
 0x102   : > { %v842_v22 = vadd.f32 %v800_v19, %v758_v1  ;;  %v848_v62 = vadd.f32 %v806_v23, %v764_v60  ;;  %v854_v31 = vadd.f32 %v812_v26, %v770_v30  ;;  %v860_v56 = vadd.f32 %v818_v34, %v776_v35  ;;  %v4676_v1 = vld [vmem:[#allocation31_spill] sm:$0xff] }
 0x103   : > { %v843_v46 = vadd.f32 %v801_v2, %v759_v9  ;;  %v849_v58 = vadd.f32 %v807_v49, %v765_v3  ;;  %v855_v51 = vadd.f32 %v813_v0, %v771_v36  ;;  %v861_v4 = vadd.f32 %v819_v45, %v777_v57  ;;  %v831_v45 = vld [vmem:[#allocation5 + $0x118] sm:$0xff]  ;;  %v833_v9 = vld [vmem:[#allocation5 + $0x128] sm:$0x1] }
 0x104   : > { %v884_v43 = vmax.f32 %v842_v22, 0.0  ;;  %v890_v10 = vmax.f32 %v848_v62, 0.0  ;;  %v896_v6 = vmax.f32 %v854_v31, 0.0  ;;  %v902_v50 = vmax.f32 %v860_v56, 0.0  ;;  %v4677_v22 = vld [vmem:[#allocation32_spill] sm:$0xff] }
 0x105   : > { %v885_v18 = vmax.f32 %v843_v46, 0.0  ;;  %v891_v38 = vmax.f32 %v849_v58, 0.0  ;;  %v897_v5 = vmax.f32 %v855_v51, 0.0  ;;  %v903_v54 = vmax.f32 %v861_v4, 0.0  ;;  %v834_v62 = vld [vmem:[#allocation5 + $0x130] sm:$0x1] }
 0x106   : > { %v707_v40 = vmul.f32 %v4175_v11, %v4671_v15  ;;  %v708_v39 = vmul.f32 %v4182_v29, %v4672_v61  ;;  %v2827_v48 = vpack.c.bf16 %v911_v47, %v910_v59  ;;  %v912_v12 = vmax.f32 %v4179_v27, 0.0  ;;  %v4674_v59 = vld [vmem:[#allocation17_spill] sm:$0xff]  ;;  %v830_v27 = vld [vmem:[#allocation5 + $0x110] sm:$0xff]  ;;  %v835_v46 = vld [vmem:[#allocation5 + $0x138] sm:$0x1] }
 0x107   : > { %v2814_v14 = vpack.c.bf16 %v885_v18, %v884_v43  ;;  %v2817_v19 = vpack.c.bf16 %v891_v38, %v890_v10  ;;  %v2820_v2 = vpack.c.bf16 %v897_v5, %v896_v6  ;;  %v2823_v21 = vpack.c.bf16 %v903_v54, %v902_v50  ;;  %v4682_v50 = vld [vmem:[#allocation19_spill] sm:$0xff]  ;;  %v4683_v54 = vld [vmem:[#allocation18_spill] sm:$0xff] }
 0x108   : > { %v782_v24 = vadd.f32 %v4063_v33, %v707_v40  ;;  %v783_v17 = vadd.f32 %v4668_v16, %v708_v39  ;;  %1072 = vst [vmem:[#allocation2 + $0x78] sm:$0xff] %v2827_v48  ;;  %v913_v23 = vmax.f32 %v4184_v13, 0.0  ;;  %v713_v26 = vmul.f32 %v4175_v11, %v4673_v53  ;;  %v4675_v13 = vld [vmem:[#allocation29_spill] sm:$0xff] }
 0x109   : > { %1059 = vst.msk [vmem:[#allocation2 + $0x10] sm:$0xff] %vm4216_vm8, %v2814_v14  ;;  %1062 = vst.msk [vmem:[#allocation2 + $0x28] sm:$0xff] %vm4216_vm8, %v2817_v19  ;;  %v714_v47 = vmul.f32 %v4182_v29, %v4674_v59  ;;  %v716_v25 = vmul.f32 %v4080_v37, %v4675_v13  ;;  %v790_v34 = vadd.f32 %v4657_v32, %v4188_v8  ;;  %v836_v40 = vld [vmem:[#allocation5 + $0x140] sm:$0x1] }
 0x10a   : > { %1065 = vst.msk [vmem:[#allocation2 + $0x40] sm:$0xff] %vm4216_vm8, %v2820_v2  ;;  %1068 = vst.msk [vmem:[#allocation2 + $0x58] sm:$0xff] %vm4216_vm8, %v2823_v21  ;;  %v717_v60 = vmul.f32 %v4119_v7, %v4676_v1  ;;  %v866_v49 = vadd.f32 %v824_v44, %v782_v24  ;;  %v867_v30 = vadd.f32 %v825_v42, %v783_v17  ;;  %v1085_v19 = vld [vmem:[#allocation2 + $0x98] sm:$0x11]  ;;  %v1091_v24 = vld [vmem:[#allocation2 + $0xa0] sm:$0x11] }
 0x10b   : > { %v2828_v0 = vpack.c.bf16 %v913_v23, %v912_v12  ;;  %v788_v35 = vadd.f32 %v4063_v33, %v713_v26  ;;  %v789_v3 = vadd.f32 %v4668_v16, %v714_v47  ;;  %v791_v36 = vadd.f32 %v4659_v52, %v716_v25 }
 0x10c   : > { %v874_v57 = vadd.f32 %v832_v28, %v790_v34  ;;  %v718_v37 = vmul.f32 %v4124_v20, %v4677_v22  ;;  %v908_v32 = vmax.f32 %v866_v49, 0.0  ;;  %v909_v8 = vmax.f32 %v867_v30, 0.0 }
 0x10d   : > { %1073 = vst [vmem:[#allocation2 + $0x80] sm:$0xff] %v2828_v0  ;;  %v872_v7 = vadd.f32 %v830_v27, %v788_v35  ;;  %v792_v56 = vadd.f32 %v3972_v55, %v717_v60  ;;  %v873_v58 = vadd.f32 %v831_v45, %v789_v3  ;;  %v875_v52 = vadd.f32 %v833_v9, %v791_v36 }
 0x10e   : > { %v916_v51 = vmax.f32 %v874_v57, 0.0  ;;  %v793_v4 = vadd.f32 %v3978_v41, %v718_v37  ;;  %v2826_v43 = vpack.c.bf16 %v909_v8, %v908_v32  ;;  %v719_v18 = vmul.f32 %v4175_v11, %v4682_v50  ;;  %v1082_v41 = vld [vmem:[#allocation2 + $0x90] sm:$0x11]  ;;  %v837_v11 = vld [vmem:[#allocation5 + $0x148] sm:$0x1] }
 0x10f   : > { %v914_v10 = vmax.f32 %v872_v7, 0.0  ;;  %v876_v6 = vadd.f32 %v834_v62, %v792_v56  ;;  %v915_v38 = vmax.f32 %v873_v58, 0.0  ;;  %v917_v55 = vmax.f32 %v875_v52, 0.0 }
 0x110   : > { %v877_v5 = vadd.f32 %v835_v46, %v793_v4  ;;  %v720_v15 = vmul.f32 %v4182_v29, %v4683_v54  ;;  %1071 = vst.msk [vmem:[#allocation2 + $0x70] sm:$0xff] %vm4216_vm8, %v2826_v43  ;;  %v794_v39 = vadd.f32 %v4063_v33, %v719_v18 }
 0x111   : > { %v918_v61 = vmax.f32 %v876_v6, 0.0  ;;  %v2829_v48 = vpack.c.bf16 %v915_v38, %v914_v10  ;;  %v2830_v12 = vpack.c.bf16 %v917_v55, %v916_v51 }
 0x112   : > { %v919_v14 = vmax.f32 %v877_v5, 0.0  ;;  %v795_v29 = vadd.f32 %v4668_v16, %v720_v15  ;;  %v878_v2 = vadd.f32 %v836_v40, %v794_v39 }
 0x113   : > { %1074 = vst.msk [vmem:[#allocation2 + $0x88] sm:$0xff] %vm4216_vm8, %v2829_v48  ;;  %v1083_v21 = vsel %vm1081_vm11, %v2830_v12, %v1082_v41 }
 0x114   : > { %v2831_v44 = vpack.c.bf16 %v919_v14, %v918_v61  ;;  %v879_v33 = vadd.f32 %v837_v11, %v795_v29  ;;  %1084 = vst [vmem:[#allocation2 + $0x90] sm:$0x11] %v1083_v21  ;;  %v920_v42 = vmax.f32 %v878_v2, 0.0 }
 0x116   : > { %v1086_v16 = vsel %vm1081_vm11, %v2831_v44, %v1085_v19  ;;  %v921_v63 = vmax.f32 %v879_v33, 0.0 }
 0x117   : > { %1087 = vst [vmem:[#allocation2 + $0x98] sm:$0x11] %v1086_v16 }
 0x118   : > { %v2832_v17 = vpack.c.bf16 %v921_v63, %v920_v42 }
 0x11a   : > { %v1092_v23 = vsel %vm1090_vm14, %v2832_v17, %v1091_v24 }
 0x11b   : > { %1093 = vst [vmem:[#allocation2 + $0xa0] sm:$0x11] %v1092_v23 }
 0x11c PF: > { %v3050_v53 = vld [vmem:[%s3638_s6 + $0x4] ss:$12 sps:$4 sm:$0xff]   ;;  %v3054_v28 = vld [vmem:[%s3638_s6] ss:$12 sps:$4 sm:$0xff]   ;;  %v3056_v47 = vld [vmem:[%s3638_s6 + $0x1c] ss:$12 sps:$4 sm:$0xff]  }
 0x11d   : > { %v3052_v26 = vld [vmem:[%s3638_s6 + $0x304] ss:$12 sps:$4 sm:$0xff]   ;;  %2075 = vmatprep.subr.bf16.mxu0 %v3050_v53  ;;  %v3055_v59 = vld [vmem:[%s3638_s6 + $0x300] ss:$12 sps:$4 sm:$0xff]   ;;  %v3058_v27 = vld [vmem:[%s3638_s6 + $0x31c] ss:$12 sps:$4 sm:$0xff]  }
 0x11e   : > { %2217 = vmatprep.subr.bf16.mxu1 %v3052_v26  ;;  %2076 = vmatpush1.bf16.msra.mxu0 %v3054_v28  ;;  %v3060_v13 = vld [vmem:[%s3638_s6 + $0x18] ss:$12 sps:$4 sm:$0xff]   ;;  %v3062_v34 = vld [vmem:[%s3638_s6 + $0x34] ss:$12 sps:$4 sm:$0xff]   ;;  %v3066_v60 = vld [vmem:[%s3638_s6 + $0x30] ss:$12 sps:$4 sm:$0xff]  }
 0x11f   : > { %2218 = vmatpush1.bf16.msra.mxu1 %v3055_v59  ;;  %2077 = vmatprep.subr.bf16.mxu0 %v3056_v47  ;;  %v3061_v25 = vld [vmem:[%s3638_s6 + $0x318] ss:$12 sps:$4 sm:$0xff]   ;;  %v3064_v1 = vld [vmem:[%s3638_s6 + $0x334] ss:$12 sps:$4 sm:$0xff]   ;;  %v3067_v49 = vld [vmem:[%s3638_s6 + $0x330] ss:$12 sps:$4 sm:$0xff]  }
 0x120   : > { %2219 = vmatprep.subr.bf16.mxu1 %v3058_v27  ;;  %v3068_v30 = vld [vmem:[%s3638_s6 + $0x4c] ss:$12 sps:$4 sm:$0xff]   ;;  %v3072_v35 = vld [vmem:[%s3638_s6 + $0x48] ss:$12 sps:$4 sm:$0xff]   ;;  %v3074_v9 = vld [vmem:[%s3638_s6 + $0x64] ss:$12 sps:$4 sm:$0xff]  }
 0x121   : > { %v3070_v0 = vld [vmem:[%s3638_s6 + $0x34c] ss:$12 sps:$4 sm:$0xff]   ;;  %v3073_v45 = vld [vmem:[%s3638_s6 + $0x348] ss:$12 sps:$4 sm:$0xff]   ;;  %v3076_v3 = vld [vmem:[%s3638_s6 + $0x364] ss:$12 sps:$4 sm:$0xff]  }
 0x122   : > { %2078 = vmatpush1.bf16.msra.mxu0 %v3060_v13  ;;  %v3078_v36 = vld [vmem:[%s3638_s6 + $0x60] ss:$12 sps:$4 sm:$0xff]   ;;  %v3080_v22 = vld [vmem:[%s3638_s6 + $0x7c] ss:$12 sps:$4 sm:$0xff]   ;;  %v3084_v62 = vld [vmem:[%s3638_s6 + $0x78] ss:$12 sps:$4 sm:$0xff]  }
 0x123   : > { %2220 = vmatpush1.bf16.msra.mxu1 %v3061_v25  ;;  %2079 = vmatprep.subr.bf16.mxu0 %v3062_v34  ;;  %v3079_v57 = vld [vmem:[%s3638_s6 + $0x360] ss:$12 sps:$4 sm:$0xff]   ;;  %v3082_v37 = vld [vmem:[%s3638_s6 + $0x37c] ss:$12 sps:$4 sm:$0xff]   ;;  %v3085_v32 = vld [vmem:[%s3638_s6 + $0x378] ss:$12 sps:$4 sm:$0xff]  }
 0x124   : > { %2221 = vmatprep.subr.bf16.mxu1 %v3064_v1  ;;  %v3086_v8 = vld [vmem:[%s3638_s6 + $0x94] ss:$12 sps:$4 sm:$0xff]   ;;  %v3090_v31 = vld [vmem:[%s3638_s6 + $0x90] ss:$12 sps:$4 sm:$0xff]   ;;  %v3092_v46 = vld [vmem:[%s3638_s6 + $0xac] ss:$12 sps:$4 sm:$0xff]  }
 0x125   : > { %v3088_v7 = vld [vmem:[%s3638_s6 + $0x394] ss:$12 sps:$4 sm:$0xff]   ;;  %v3091_v56 = vld [vmem:[%s3638_s6 + $0x390] ss:$12 sps:$4 sm:$0xff]   ;;  %v3094_v58 = vld [vmem:[%s3638_s6 + $0x3ac] ss:$12 sps:$4 sm:$0xff]  }
 0x126   : > { %2080 = vmatpush1.bf16.msra.mxu0 %v3066_v60  ;;  %v3096_v52 = vld [vmem:[%s3638_s6 + $0xa8] ss:$12 sps:$4 sm:$0xff]   ;;  %vm2062_vm15 = vcmask 261120   ;;  %v3098_v4 = vld [vmem:[%s3638_s6 + $0xc4] ss:$12 sps:$4 sm:$0xff]   ;;  %vm2482_vm0 = vcmask 654336  }
 0x127   : > { %2222 = vmatpush1.bf16.msra.mxu1 %v3067_v49  ;;  %2081 = vmatprep.subr.bf16.mxu0 %v3068_v30  ;;  %v3097_v51 = vld [vmem:[%s3638_s6 + $0x3a8] ss:$12 sps:$4 sm:$0xff]   ;;  %v3100_v43 = vld [vmem:[%s3638_s6 + $0x3c4] ss:$12 sps:$4 sm:$0xff]   ;;  %v3102_v10 = vld [vmem:[%s3638_s6 + $0xc0] ss:$12 sps:$4 sm:$0xff]  }
 0x128   : > { %2223 = vmatprep.subr.bf16.mxu1 %v3070_v0  ;;  %v4324_v20 = vld [vmem:[#allocation2 + $0x14] ss:$24 sps:$4 sm:$0xff]   ;;  %v4338_v15 = vld [vmem:[#allocation2 + $0x10] ss:$24 sps:$4 sm:$0xff]   ;;  %v4344_v11 = vld [vmem:[#allocation2 + $0x44] ss:$24 sps:$4 sm:$0xff]  }
 0x129   : > { %2802 = vmatprep.mubr.msk.bf16.mxu1 %vm2062_vm15, %v4324_v20  ;;  %v3103_v6 = vld [vmem:[%s3638_s6 + $0x3c0] ss:$12 sps:$4 sm:$0xff]   ;;  %v3104_v50 = vld [vmem:[%s3638_s6 + $0xdc] ss:$12 sps:$4 sm:$0xff]   ;;  %v3108_v38 = vld [vmem:[%s3638_s6 + $0xd8] ss:$12 sps:$4 sm:$0xff]  }
 0x12a   : > { %2082 = vmatpush1.bf16.msra.mxu0 %v3072_v35  ;;  %v3106_v18 = vld [vmem:[%s3638_s6 + $0x3dc] ss:$12 sps:$4 sm:$0xff]   ;;  %v3109_v55 = vld [vmem:[%s3638_s6 + $0x3d8] ss:$12 sps:$4 sm:$0xff]   ;;  %v3113_v5 = vld [vmem:[%s3638_s6 + $0xf4] ss:$12 sps:$4 sm:$0xff]  }
 0x12b   : > { %2224 = vmatpush1.bf16.msra.mxu1 %v3073_v45  ;;  %2083 = vmatprep.subr.bf16.mxu0 %v3074_v9  ;;  %v3115_v54 = vld [vmem:[%s3638_s6 + $0xc8] ss:$12 sps:$4 sm:$0xff]   ;;  %v3116_v40 = vld [vmem:[%s3638_s6 + $0xf0] ss:$12 sps:$4 sm:$0xff]   ;;  %v3118_v61 = vld [vmem:[%s3638_s6 + $0x10c] ss:$12 sps:$4 sm:$0xff]  }
 0x12c   : > { %2225 = vmatprep.subr.bf16.mxu1 %v3076_v3  ;;  %v3117_v41 = vld [vmem:[%s3638_s6 + $0x8] ss:$12 sps:$4 sm:$0xff]   ;;  %v3120_v39 = vld [vmem:[%s3638_s6 + $0xe0] ss:$12 sps:$4 sm:$0xff]   ;;  %v3125_v14 = vld [vmem:[%s3638_s6 + $0x124] ss:$12 sps:$4 sm:$0xff]  }
 0x12d   : > { %v3121_v48 = vld [vmem:[%s3638_s6 + $0x108] ss:$12 sps:$4 sm:$0xff]   ;;  %v3122_v12 = vld [vmem:[%s3638_s6 + $0x20] ss:$12 sps:$4 sm:$0xff]   ;;  %v3128_v29 = vld [vmem:[%s3638_s6 + $0xf8] ss:$12 sps:$4 sm:$0xff]  }
 0x12e   : > { %2084 = vmatpush1.bf16.msra.mxu0 %v3078_v36  ;;  %v4353_v19 = vld [vmem:[#allocation2 + $0x40] ss:$24 sps:$4 sm:$0xff]   ;;  %v4361_v63 = vld [vmem:[#allocation2 + $0x74] ss:$24 sps:$4 sm:$0xff]   ;;  %v3152_v17 = vld [vmem:[#allocation2 + $0x4] ss:$24 sps:$4 sm:$0xff]  }
 0x12f   : > { %2226 = vmatpush1.bf16.msra.mxu1 %v3079_v57  ;;  %2085 = vmatprep.subr.bf16.mxu0 %v3080_v22  ;;  %v3129_v2 = vld [vmem:[%s3638_s6 + $0x120] ss:$12 sps:$4 sm:$0xff]   ;;  %v3130_v21 = vld [vmem:[%s3638_s6 + $0x38] ss:$12 sps:$4 sm:$0xff]   ;;  %v3131_v44 = vld [vmem:[%s3638_s6 + $0x13c] ss:$12 sps:$4 sm:$0xff]  }
 0x130   : > { %2227 = vmatprep.subr.bf16.mxu1 %v3082_v37  ;;  %v3133_v33 = vld [vmem:[%s3638_s6 + $0x110] ss:$12 sps:$4 sm:$0xff]   ;;  %v3134_v42 = vld [vmem:[%s3638_s6 + $0x138] ss:$12 sps:$4 sm:$0xff]   ;;  %v3138_v24 = vld [vmem:[%s3638_s6 + $0x154] ss:$12 sps:$4 sm:$0xff]   ;;  %2107 = vmatprep.mubr.bf16.mxu0 %v3152_v17 }
 0x131   : > { %v3135_v16 = vld [vmem:[%s3638_s6 + $0x50] ss:$12 sps:$4 sm:$0xff]   ;;  %v3141_v53 = vld [vmem:[%s3638_s6 + $0x128] ss:$12 sps:$4 sm:$0xff]   ;;  %v3144_v47 = vld [vmem:[%s3638_s6 + $0x16c] ss:$12 sps:$4 sm:$0xff]  }
 0x132   : > { %2086 = vmatpush1.bf16.msra.mxu0 %v3084_v62  ;;  %v4365_v23 = vld [vmem:[#allocation2 + $0x70] ss:$24 sps:$4 sm:$0xff]   ;;  %v1114_v28 = vld [vmem:[#allocation2 + $0xa0] sm:$0x11]  ;;  %v3174_v22 = vld [vmem:[#allocation2 + $0x34] ss:$24 sps:$4 sm:$0xff]  }
 0x133   : > { %2228 = vmatpush1.bf16.msra.mxu1 %v3085_v32  ;;  %2087 = vmatprep.subr.bf16.mxu0 %v3086_v8  ;;  %v3142_v26 = vld [vmem:[%s3638_s6 + $0x150] ss:$12 sps:$4 sm:$0xff]   ;;  %v3143_v59 = vld [vmem:[%s3638_s6 + $0x68] ss:$12 sps:$4 sm:$0xff]   ;;  %v3146_v27 = vld [vmem:[%s3638_s6 + $0x140] ss:$12 sps:$4 sm:$0xff]   ;;  %v4375_v25 = vcombine.high %v1114_v28, %v1114_v28  ;;  %v4384_v0 = vcombine.low %v1114_v28, %v1114_v28 }
 0x134   : > { %2229 = vmatprep.subr.bf16.mxu1 %v3088_v7  ;;  %v3147_v13 = vld [vmem:[%s3638_s6 + $0x168] ss:$12 sps:$4 sm:$0xff]   ;;  %v3148_v34 = vld [vmem:[%s3638_s6 + $0x80] ss:$12 sps:$4 sm:$0xff]   ;;  %v3155_v1 = vld [vmem:[%s3638_s6 + $0x184] ss:$12 sps:$4 sm:$0xff]  }
 0x135   : > { %v3157_v60 = vld [vmem:[%s3638_s6 + $0x158] ss:$12 sps:$4 sm:$0xff]   ;;  %v3153_v30 = vld [vmem:[%s3638_s6 + $0x180] ss:$12 sps:$4 sm:$0xff]   ;;  %v3161_v45 = vld [vmem:[%s3638_s6 + $0x19c] ss:$12 sps:$4 sm:$0xff]  }
 0x136   : > { %2088 = vmatpush1.bf16.msra.mxu0 %v3090_v31  ;;  %v3150_v49 = vld [vmem:[#allocation2] ss:$24 sps:$4 sm:$0xff]   ;;  %v3179_v31 = vld [vmem:[#allocation2 + $0x30] ss:$24 sps:$4 sm:$0xff]   ;;  %vm2501_vm1 = vcmask 647168  }
 0x137   : > { %2230 = vmatpush1.bf16.msra.mxu1 %v3091_v56  ;;  %2089 = vmatprep.subr.bf16.mxu0 %v3092_v46  ;;  %v3158_v35 = vld [vmem:[%s3638_s6 + $0x98] ss:$12 sps:$4 sm:$0xff]   ;;  %v3162_v9 = vld [vmem:[%s3638_s6 + $0x170] ss:$12 sps:$4 sm:$0xff]   ;;  %v3166_v57 = vld [vmem:[%s3638_s6 + $0x1b4] ss:$12 sps:$4 sm:$0xff]  }
 0x138   : > { %2231 = vmatprep.subr.bf16.mxu1 %v3094_v58  ;;  %v3159_v3 = vld [vmem:[%s3638_s6 + $0x198] ss:$12 sps:$4 sm:$0xff]   ;;  %v3163_v36 = vld [vmem:[%s3638_s6 + $0xb0] ss:$12 sps:$4 sm:$0xff]   ;;  %v3167_v37 = vld [vmem:[%s3638_s6 + $0x248] ss:$12 sps:$4 sm:$0xff]  }
 0x139   : > { %v3164_v62 = vld [vmem:[%s3638_s6 + $0x1b0] ss:$12 sps:$4 sm:$0xff]   ;;  %v3168_v32 = vld [vmem:[%s3638_s6 + $0x188] ss:$12 sps:$4 sm:$0xff]   ;;  %v3171_v8 = vld [vmem:[%s3638_s6 + $0x1cc] ss:$12 sps:$4 sm:$0xff]  }
 0x13a   : > { %2090 = vmatpush1.bf16.msra.mxu0 %v3096_v52  ;;  %v3172_v7 = vld [vmem:[%s3638_s6 + $0x260] ss:$12 sps:$4 sm:$0xff]   ;;  %v3169_v56 = vld [vmem:[%s3638_s6 + $0x1c8] ss:$12 sps:$4 sm:$0xff]   ;;  %v3178_v58 = vld [vmem:[%s3638_s6 + $0x1e4] ss:$12 sps:$4 sm:$0xff]  }
 0x13b   : > { %2232 = vmatpush1.bf16.msra.mxu1 %v3097_v51  ;;  %2091 = vmatprep.subr.bf16.mxu0 %v3098_v4  ;;  %v3173_v46 = vld [vmem:[%s3638_s6 + $0x1a0] ss:$12 sps:$4 sm:$0xff]   ;;  %v3180_v51 = vld [vmem:[%s3638_s6 + $0x278] ss:$12 sps:$4 sm:$0xff]  }
 0x13c   : > { %2233 = vmatprep.subr.bf16.mxu1 %v3100_v43  ;;  %v3187_v52 = vld [vmem:[#allocation2 + $0x64] ss:$24 sps:$4 sm:$0xff]   ;;  %v3212_v28 = vld [vmem:[#allocation2 + $0x8] ss:$24 sps:$4 sm:$0xff]  }
 0x13d   : > { %v3176_v4 = vld [vmem:[%s3638_s6 + $0x1e0] ss:$12 sps:$4 sm:$0xff]   ;;  %v3181_v43 = vld [vmem:[%s3638_s6 + $0x1b8] ss:$12 sps:$4 sm:$0xff]  }
 0x13e   : > { %2092 = vmatpush1.bf16.msra.mxu0 %v3102_v10  ;;  %v3184_v10 = vld [vmem:[%s3638_s6 + $0x1fc] ss:$12 sps:$4 sm:$0xff]  }
 0x13f   : > { %2234 = vmatpush1.bf16.msra.mxu1 %v3103_v6  ;;  %2093 = vmatprep.subr.bf16.mxu0 %v3104_v50  ;;  %v3185_v6 = vld [vmem:[%s3638_s6 + $0x290] ss:$12 sps:$4 sm:$0xff]  }
 0x140   : > { %2235 = vmatprep.subr.bf16.mxu1 %v3106_v18  ;;  %v3192_v50 = vld [vmem:[#allocation2 + $0x60] ss:$24 sps:$4 sm:$0xff]   ;;  %v1112_v18 = vld [vmem:[#allocation2 + $0x90] sm:$0x11] }
 0x142   : > { %2094 = vmatpush1.bf16.msra.mxu0 %v3108_v38  ;;  %v3182_v38 = vld [vmem:[%s3638_s6 + $0x1f8] ss:$12 sps:$4 sm:$0xff]  }
 0x143   : > { %2236 = vmatpush1.bf16.msra.mxu1 %v3109_v55  ;;  %2095 = vmatprep.subr.bf16.mxu0 %v3113_v5  ;;  %v3186_v55 = vld [vmem:[%s3638_s6 + $0x1d0] ss:$12 sps:$4 sm:$0xff]   ;;  %v3191_v5 = vld [vmem:[%s3638_s6 + $0x214] ss:$12 sps:$4 sm:$0xff]  }
 0x144   : > { %2833 = vmatprep.subr.bf16.mxu1 %v3115_v54  ;;  %v2671_v54 = vcombine.high %v1112_v18, %v1112_v18 }
 0x146   : > { %2250 = vmatmul.mubr.bf16.vlgmr.msra.gmra.mrb[0].mxu1 %v4338_v15  ;;  %2096 = vmatpush1.bf16.msra.mxu0 %v3116_v40  ;;  %v3193_v40 = vld [vmem:[%s3638_s6 + $0x2a8] ss:$12 sps:$4 sm:$0xff]  }
 0x147   : > { %2834 = vmatpush3.bf16.msra.mxu1 %v3117_v41  ;;  %2097 = vmatprep.subr.bf16.mxu0 %v3118_v61  ;;  %v3189_v41 = vld [vmem:[%s3638_s6 + $0x210] ss:$12 sps:$4 sm:$0xff]   ;;  %v3194_v61 = vld [vmem:[%s3638_s6 + $0x1e8] ss:$12 sps:$4 sm:$0xff]  }
 0x148   : > { %2835 = vmatprep.subr.bf16.mxu1 %v3120_v39  ;;  %2803 = vmatprep.mubr.msk.bf16.mxu1 %vm2062_vm15, %v4344_v11  ;;  %v3197_v39 = vld [vmem:[%s3638_s6 + $0x22c] ss:$12 sps:$4 sm:$0xff]  }
 0x14a   : > { %2098 = vmatpush1.bf16.msra.mxu0 %v3121_v48  ;;  %v3198_v48 = vld [vmem:[%s3638_s6 + $0x2c0] ss:$12 sps:$4 sm:$0xff]  }
 0x14b   : > { %2836 = vmatpush3.bf16.msra.mxu1 %v3122_v12  ;;  %2099 = vmatprep.subr.bf16.mxu0 %v3125_v14  ;;  %v2670_v12 = vcombine.low %v1112_v18, %v1112_v18  ;;  %v3195_v14 = vld [vmem:[%s3638_s6 + $0x228] ss:$12 sps:$4 sm:$0xff]  }
 0x14c   : > { %2837 = vmatprep.subr.bf16.mxu1 %v3128_v29  ;;  %v3199_v29 = vld [vmem:[%s3638_s6 + $0x200] ss:$12 sps:$4 sm:$0xff]  }
 0x14e   : > { %2260 = vmatmul.mubr.bf16.gmra.mrb[4].mxu1 %v4353_v19  ;;  %2100 = vmatpush1.bf16.msra.mxu0 %v3129_v2  ;;  %v3214_v2 = vld [vmem:[#allocation2 + $0xc] ss:$24 sps:$4 sm:$0xff]  }
 0x14f   : > { %2838 = vmatpush3.bf16.msra.mxu1 %v3130_v21  ;;  %2101 = vmatprep.subr.bf16.mxu0 %v3131_v44  ;;  %v3203_v21 = vld [vmem:[%s3638_s6 + $0x244] ss:$12 sps:$4 sm:$0xff]  }
 0x150   : > { %2839 = vmatprep.subr.bf16.mxu1 %v3133_v33  ;;  %2804 = vmatprep.mubr.msk.bf16.mxu1 %vm2062_vm15, %v4361_v63  ;;  %v3205_v44 = vld [vmem:[%s3638_s6 + $0x2d8] ss:$12 sps:$4 sm:$0xff]   ;;  %v3201_v33 = vld [vmem:[%s3638_s6 + $0x240] ss:$12 sps:$4 sm:$0xff]  }
 0x152   : > { %2102 = vmatpush1.bf16.msra.mxu0 %v3134_v42  ;;  %v3206_v42 = vld [vmem:[%s3638_s6 + $0x218] ss:$12 sps:$4 sm:$0xff]  }
 0x153   : > { %2840 = vmatpush3.bf16.msra.mxu1 %v3135_v16  ;;  %2103 = vmatprep.subr.bf16.mxu0 %v3138_v24  ;;  %v3209_v16 = vld [vmem:[%s3638_s6 + $0x25c] ss:$12 sps:$4 sm:$0xff]  }
 0x154   : > { %2841 = vmatprep.subr.bf16.mxu1 %v3141_v53  ;;  %v3210_v24 = vld [vmem:[%s3638_s6 + $0x2f0] ss:$12 sps:$4 sm:$0xff]  }
 0x155   : > { %v3211_v53 = vld [vmem:[%s3638_s6 + $0x230] ss:$12 sps:$4 sm:$0xff]  }
 0x156   : > { %2270 = vmatmul.mubr.bf16.gmra.mrb[8].mxu1 %v4365_v23  ;;  %2104 = vmatpush1.bf16.msra.mxu0 %v3142_v26  ;;  %v3217_v26 = vld [vmem:[%s3638_s6 + $0x274] ss:$12 sps:$4 sm:$0xff]  }
 0x157   : > { %2842 = vmatpush3.bf16.msra.mxu1 %v3143_v59  ;;  %2105 = vmatprep.subr.bf16.mxu0 %v3144_v47  ;;  %v3215_v59 = vld [vmem:[%s3638_s6 + $0x270] ss:$12 sps:$4 sm:$0xff]   ;;  %v3218_v47 = vld [vmem:[%s3638_s6 + $0x308] ss:$12 sps:$4 sm:$0xff]  }
 0x158   : > { %2843 = vmatprep.subr.bf16.mxu1 %v3146_v27  ;;  %2805 = vmatprep.mubr.msk.bf16.mxu1 %vm2062_vm15, %v4375_v25  ;;  %v3433_v27 = vmov 0  }
 0x15a   : > { %2106 = vmatpush1.bf16.msra.mxu0 %v3147_v13  ;;  %v3221_v13 = vld [vmem:[%s3638_s6 + $0x28c] ss:$12 sps:$4 sm:$0xff]  }
 0x15b   : > { %2844 = vmatpush3.bf16.msra.mxu1 %v3148_v34  ;;  %2146 = vmatprep.subr.bf16.mxu0 %v3155_v1  ;;  %v3223_v34 = vld [vmem:[#allocation2 + $0x3c] ss:$24 sps:$4 sm:$0xff]  }
 0x15c   : > { %2845 = vmatprep.subr.bf16.mxu1 %v3157_v60  ;;  %v3219_v1 = vld [vmem:[%s3638_s6 + $0x288] ss:$12 sps:$4 sm:$0xff]   ;;  %v3222_v60 = vld [vmem:[%s3638_s6 + $0x320] ss:$12 sps:$4 sm:$0xff]  }
 0x15d   : > { %2108 = vmatmul.mubr.bf16.vlgmr.msra.gmra.mrb[0].mxu0 %v3150_v49 }
 0x15e   : > { %2280 = vmatmul.mubr.bf16.gmra.mrb[12].mxu1 %v4384_v0  ;;  %2147 = vmatpush1.bf16.msra.mxu0 %v3153_v30  ;;  %v3228_v30 = vld [vmem:[#allocation2 + $0x38] ss:$24 sps:$4 sm:$0xff]  }
 0x15f   : > { %2846 = vmatpush3.bf16.msra.mxu1 %v3158_v35  ;;  %2148 = vmatprep.subr.bf16.mxu0 %v3161_v45  ;;  %v3225_v35 = vld [vmem:[%s3638_s6 + $0x2a0] ss:$12 sps:$4 sm:$0xff]   ;;  %v3229_v45 = vld [vmem:[%s3638_s6 + $0x338] ss:$12 sps:$4 sm:$0xff]  }
 0x160   : > { %2847 = vmatprep.subr.bf16.mxu1 %v3162_v9  ;;  %2320 = vmatprep.mubr.bf16.mxu1 %v3152_v17  ;;  %v3207_v17 = vld [vmem:[%s3638_s6 + $0x258] ss:$12 sps:$4 sm:$0xff]   ;;  %v3232_v9 = vld [vmem:[%s3638_s6 + $0x2bc] ss:$12 sps:$4 sm:$0xff]  }
 0x161   : > { %2117 = vmatprep.mubr.bf16.mxu0 %v3174_v22 }
 0x162   : > { %2149 = vmatpush1.bf16.msra.mxu0 %v3159_v3  ;;  %v3234_v3 = vld [vmem:[#allocation2 + $0x6c] ss:$24 sps:$4 sm:$0xff]  }
 0x163   : > { %2848 = vmatpush3.bf16.msra.mxu1 %v3163_v36  ;;  %2150 = vmatprep.subr.bf16.mxu0 %v3166_v57  ;;  %v3230_v36 = vld [vmem:[%s3638_s6 + $0x2b8] ss:$12 sps:$4 sm:$0xff]   ;;  %v3233_v57 = vld [vmem:[%s3638_s6 + $0x350] ss:$12 sps:$4 sm:$0xff]  }
 0x164   : > { %2873 = vmatprep.subr.bf16.mxu1 %v3167_v37  ;;  %v3239_v37 = vld [vmem:[#allocation2 + $0x68] ss:$24 sps:$4 sm:$0xff]  }
 0x165   : > { %2118 = vmatmul.mubr.bf16.gmra.mrb[4].mxu0 %v3179_v31 }
 0x166   : > { %2321 = vmatmul.mubr.bf16.vlgmr.msra.gmra.mrb[16].mxu1 %v3150_v49  ;;  %2151 = vmatpush1.bf16.msra.mxu0 %v3164_v62  ;;  %v3227_v49 = vld [vmem:[%s3638_s6 + $0x2a4] ss:$12 sps:$4 sm:$0xff]  }
 0x167   : > { %2874 = vmatpush3.bf16.msra.mxu1 %v3168_v32  ;;  %2152 = vmatprep.subr.bf16.mxu0 %v3171_v8  ;;  %v1113_v62 = vld [vmem:[#allocation2 + $0x98] sm:$0x11]  ;;  %v3236_v32 = vld [vmem:[%s3638_s6 + $0x2d0] ss:$12 sps:$4 sm:$0xff]  }
 0x168   : > { %2875 = vmatprep.subr.bf16.mxu1 %v3172_v7  ;;  %2328 = vmatprep.mubr.bf16.mxu1 %v3174_v22  ;;  %v3238_v22 = vld [vmem:[%s3638_s6 + $0x2d4] ss:$12 sps:$4 sm:$0xff]   ;;  %v3243_v7 = vld [vmem:[%s3638_s6 + $0x2ec] ss:$12 sps:$4 sm:$0xff]  }
 0x169   : > { %2127 = vmatprep.mubr.bf16.mxu0 %v3187_v52  ;;  %v3240_v8 = vld [vmem:[%s3638_s6 + $0x368] ss:$12 sps:$4 sm:$0xff]  }
 0x16a   : > { %2153 = vmatpush1.bf16.msra.mxu0 %v3169_v56  ;;  %v3241_v56 = vld [vmem:[%s3638_s6 + $0x2e8] ss:$12 sps:$4 sm:$0xff]  }
 0x16b   : > { %2876 = vmatpush3.bf16.msra.mxu1 %v3173_v46  ;;  %2154 = vmatprep.subr.bf16.mxu0 %v3178_v58  ;;  %v3244_v46 = vld [vmem:[%s3638_s6 + $0x380] ss:$12 sps:$4 sm:$0xff]   ;;  %v2672_v58 = vcombine.low %v1113_v62, %v1113_v62 }
 0x16c   : > { %2877 = vmatprep.subr.bf16.mxu1 %v3180_v51  ;;  %v3248_v51 = vld [vmem:[%s3638_s6 + $0x3b0] ss:$12 sps:$4 sm:$0xff]  }
 0x16d   : > { %2128 = vmatmul.mubr.bf16.gmra.mrb[8].mxu0 %v3192_v50 }
 0x16e   : > { %2329 = vmatmul.mubr.bf16.gmra.mrb[20].mxu1 %v3179_v31  ;;  %2155 = vmatpush1.bf16.msra.mxu0 %v3176_v4  ;;  %v2673_v31 = vcombine.high %v1113_v62, %v1113_v62  ;;  %v3249_v4 = vld [vmem:[%s3638_s6 + $0x3c8] ss:$12 sps:$4 sm:$0xff]  }
 0x16f   : > { %2878 = vmatpush3.bf16.msra.mxu1 %v3181_v43  ;;  %2156 = vmatprep.subr.bf16.mxu0 %v3184_v10  ;;  %v3250_v43 = vld [vmem:[%s3638_s6 + $0x3e0] ss:$12 sps:$4 sm:$0xff]  }
 0x170   : > { %2879 = vmatprep.subr.bf16.mxu1 %v3185_v6  ;;  %2336 = vmatprep.mubr.bf16.mxu1 %v3187_v52  ;;  %v3247_v52 = vld [vmem:[%s3638_s6 + $0x398] ss:$12 sps:$4 sm:$0xff]  }
 0x171   : > { %2137 = vmatprep.mubr.bf16.mxu0 %v2671_v54 }
 0x172   : > { %2157 = vmatpush1.bf16.msra.mxu0 %v3182_v38 }
 0x173   : > { %2880 = vmatpush3.bf16.msra.mxu1 %v3186_v55  ;;  %2158 = vmatprep.subr.bf16.mxu0 %v3191_v5 }
 0x174   : > { %2881 = vmatprep.subr.bf16.mxu1 %v3193_v40 }
 0x175   : > { %2138 = vmatmul.mubr.bf16.gmra.mrb[12].mxu0 %v2670_v12 }
 0x176   : > { %2337 = vmatmul.mubr.bf16.gmra.mrb[24].mxu1 %v3192_v50  ;;  %2159 = vmatpush1.bf16.msra.mxu0 %v3189_v41 }
 0x177   : > { %2882 = vmatpush3.bf16.msra.mxu1 %v3194_v61  ;;  %2160 = vmatprep.subr.bf16.mxu0 %v3197_v39 }
 0x178   : > { %2883 = vmatprep.subr.bf16.mxu1 %v3198_v48  ;;  %2344 = vmatprep.mubr.bf16.mxu1 %v2671_v54 }
 0x179   : > { %2178 = vmatprep.mubr.bf16.mxu0 %v3214_v2 }
 0x17a   : > { %2161 = vmatpush1.bf16.msra.mxu0 %v3195_v14 }
 0x17b   : > { %2884 = vmatpush3.bf16.msra.mxu1 %v3199_v29  ;;  %2162 = vmatprep.subr.bf16.mxu0 %v3203_v21 }
 0x17c   : > { %2885 = vmatprep.subr.bf16.mxu1 %v3205_v44 }
 0x17e   : > { %2345 = vmatmul.mubr.bf16.gmra.mrb[28].mxu1 %v2670_v12  ;;  %2163 = vmatpush1.bf16.msra.mxu0 %v3201_v33 }
 0x17f   : > { %2886 = vmatpush3.bf16.msra.mxu1 %v3206_v42  ;;  %2164 = vmatprep.subr.bf16.mxu0 %v3209_v16 }
 0x180   : > { %2887 = vmatprep.subr.bf16.mxu1 %v3210_v24  ;;  %2384 = vmatprep.mubr.bf16.mxu1 %v3214_v2 }
 0x182   : > { %2165 = vmatpush1.bf16.msra.mxu0 %v3207_v17 }
 0x183   : > { %2888 = vmatpush3.bf16.msra.mxu1 %v3211_v53  ;;  %2166 = vmatprep.subr.bf16.mxu0 %v3217_v26 }
 0x184   : > { %2416 = vmatprep.subr.bf16.mxu1 %v3433_v27 }
 0x186   : > { %2385 = vmatmul.mubr.bf16.vlgmr.msra.gmra.mrb[32].mxu1 %v3212_v28  ;;  %2167 = vmatpush1.bf16.msra.mxu0 %v3215_v59 }
 0x187   : > { %2417 = vmatpush1.bf16.msra.mxu1 %v3218_v47  ;;  %2168 = vmatprep.subr.bf16.mxu0 %v3221_v13 }
 0x188   : > { %2418 = vmatprep.subr.bf16.mxu1 %v3433_v27  ;;  %2392 = vmatprep.mubr.bf16.mxu1 %v3223_v34 }
 0x18a   : > { %2169 = vmatpush1.bf16.msra.mxu0 %v3219_v1 }
 0x18b   : > { %2419 = vmatpush1.bf16.msra.mxu1 %v3222_v60  ;;  %2170 = vmatprep.subr.bf16.mxu0 %v3227_v49 }
 0x18c   : > { %2420 = vmatprep.subr.bf16.mxu1 %v3433_v27 }
 0x18e   : > { %2393 = vmatmul.mubr.bf16.gmra.mrb[36].mxu1 %v3228_v30  ;;  %2171 = vmatpush1.bf16.msra.mxu0 %v3225_v35 }
 0x18f   : > { %2421 = vmatpush1.bf16.msra.mxu1 %v3229_v45  ;;  %2172 = vmatprep.subr.bf16.mxu0 %v3232_v9 }
 0x190   : > { %2422 = vmatprep.subr.bf16.mxu1 %v3433_v27  ;;  %2400 = vmatprep.mubr.bf16.mxu1 %v3234_v3 }
 0x192   : > { %2173 = vmatpush1.bf16.msra.mxu0 %v3230_v36 }
 0x193   : > { %2423 = vmatpush1.bf16.msra.mxu1 %v3233_v57  ;;  %2174 = vmatprep.subr.bf16.mxu0 %v3238_v22 }
 0x194   : > { %2424 = vmatprep.subr.bf16.mxu1 %v3433_v27 }
 0x196   : > { %2401 = vmatmul.mubr.bf16.gmra.mrb[40].mxu1 %v3239_v37  ;;  %2175 = vmatpush1.bf16.msra.mxu0 %v3236_v32 }
 0x197   : > { %2425 = vmatpush1.bf16.msra.mxu1 %v3240_v8  ;;  %2176 = vmatprep.subr.bf16.mxu0 %v3243_v7 }
 0x198   : > { %2426 = vmatprep.subr.bf16.mxu1 %v3433_v27  ;;  %2408 = vmatprep.mubr.bf16.mxu1 %v2673_v31 }
 0x19a   : > { %2177 = vmatpush1.bf16.msra.mxu0 %v3241_v56 }
 0x19b   : > { %2427 = vmatpush1.bf16.msra.mxu1 %v3244_v46 }
 0x19c   : > { %2428 = vmatprep.subr.bf16.mxu1 %v3433_v27 }
 0x19d   : > { %2179 = vmatmul.mubr.bf16.vlgmr.msra.gmra.mrb[0].mxu0 %v3212_v28 }
 0x19e   : > { %2409 = vmatmul.mubr.bf16.gmra.mrb[44].mxu1 %v2672_v58  ;;  %2188 = vmatprep.mubr.bf16.mxu0 %v3223_v34 }
 0x19f   : > { %2429 = vmatpush1.bf16.msra.mxu1 %v3247_v52  ;;  %2806 = vmatprep.mubr.msk.bf16.mxu1 %vm2062_vm15, %v4324_v20 }
 0x1a0   : > { %2430 = vmatprep.subr.bf16.mxu1 %v3433_v27 }
 0x1a3   : > { %2431 = vmatpush1.bf16.msra.mxu1 %v3248_v51 }
 0x1a4   : > { %2432 = vmatprep.subr.bf16.mxu1 %v3433_v27 }
 0x1a5   : > { %2189 = vmatmul.mubr.bf16.gmra.mrb[4].mxu0 %v3228_v30 }
 0x1a6   : > { %2198 = vmatprep.mubr.bf16.mxu0 %v3234_v3 }
 0x1a7   : > { %2433 = vmatpush1.bf16.msra.mxu1 %v3249_v4 }
 0x1a8   : > { %2434 = vmatprep.subr.bf16.mxu1 %v3433_v27 }
 0x1ab   : > { %2435 = vmatpush1.bf16.msra.mxu1 %v3250_v43 }
 0x1ad   : > { %2199 = vmatmul.mubr.bf16.gmra.mrb[8].mxu0 %v3239_v37 }
 0x1ae   : > { %2449 = vmatmul.mubr.bf16.vlgmr.msra.gmra.mrb[48].mxu1 %v4338_v15  ;;  %2208 = vmatprep.mubr.bf16.mxu0 %v2673_v31 }
 0x1af   : > { %2807 = vmatprep.mubr.msk.bf16.mxu1 %vm2062_vm15, %v4344_v11 }
 0x1b5   : > { %2209 = vmatmul.mubr.bf16.gmra.mrb[12].mxu0 %v2672_v58 }
 0x1b6   : > { %2457 = vmatmul.mubr.bf16.gmra.mrb[52].mxu1 %v4353_v19 }
 0x1b7   : > { %2808 = vmatprep.mubr.msk.bf16.mxu1 %vm2062_vm15, %v4361_v63 }
 0x1be   : > { %2465 = vmatmul.mubr.bf16.gmra.mrb[56].mxu1 %v4365_v23 }
 0x1bf   : > { %2809 = vmatprep.mubr.msk.bf16.mxu1 %vm2062_vm15, %v4375_v25 }
 0x1c6   : > { %2473 = vmatmul.mubr.bf16.gmra.mrb[60].mxu1 %v4384_v0 }
 0x219   : > { %v4468_v20 = vpop.f32.mrb[0].mxu1 }
 0x21a   : > { %v4470_v15 = vpop.f32.mrb[1].mxu1 }
 0x21b   : > { %v4472_v10 = vpop.f32.mrb[2].mxu1 }
 0x21c   : > { %v4474_v11 = vpop.f32.mrb[3].mxu1 }
 0x221   : > { %v4476_v6 = vpop.f32.mrb[4].mxu1 }
 0x222   : > { %v4478_v19 = vpop.f32.mrb[5].mxu1 }
 0x223   : > { %v4480_v63 = vpop.f32.mrb[6].mxu1 }
 0x224   : > { %v4482_v23 = vpop.f32.mrb[7].mxu1 }
 0x229   : > { %v4484_v50 = vpop.f32.mrb[8].mxu1 }
 0x22a   : > { %v4486_v25 = vpop.f32.mrb[9].mxu1 }
 0x22b   : > { %v4488_v0 = vpop.f32.mrb[10].mxu1 }
 0x22c   : > { %v4490_v18 = vpop.f32.mrb[11].mxu1 }
 0x231   : > { %v4492_v38 = vpop.f32.mrb[12].mxu1 }
 0x232   : > { %v4494_v55 = vpop.f32.mrb[13].mxu1 }
 0x233   : > { %v2285_v5 = vpop.f32.mrb[14].mxu1 }
 0x234   : > { %v2286_v54 = vpop.f32.mrb[15].mxu1 }
 0x239   : > { %v2849_v40 = vpop.f32.mrb[16].mxu1 }
 0x23a   : > { %v2850_v41 = vpop.f32.mrb[17].mxu1 }
 0x23b   : > { %v2851_v61 = vadd.f32 %v2850_v41, %v2849_v40  ;;  %v2852_v39 = vpop.f32.mrb[18].mxu1 }
 0x23c   : > { %v2853_v48 = vpop.f32.mrb[19].mxu1 }
 0x23d   : > { %v2854_v12 = vadd.f32 %v2853_v48, %v2852_v39 }
 0x241   : > { %v2855_v14 = vpop.f32.mrb[20].mxu1 }
 0x242   : > { %v2856_v29 = vpop.f32.mrb[21].mxu1 }
 0x243   : > { %v2857_v2 = vadd.f32 %v2856_v29, %v2855_v14  ;;  %v2858_v21 = vpop.f32.mrb[22].mxu1 }
 0x244   : > { %v2859_v44 = vpop.f32.mrb[23].mxu1 }
 0x245   : > { %v2860_v33 = vadd.f32 %v2859_v44, %v2858_v21 }
 0x249   : > { %v2861_v42 = vpop.f32.mrb[24].mxu1 }
 0x24a   : > { %v2862_v16 = vpop.f32.mrb[25].mxu1 }
 0x24b   : > { %v2863_v24 = vadd.f32 %v2862_v16, %v2861_v42  ;;  %v2864_v17 = vpop.f32.mrb[26].mxu1 }
 0x24c   : > { %v2865_v53 = vpop.f32.mrb[27].mxu1 }
 0x24d   : > { %v2866_v26 = vadd.f32 %v2865_v53, %v2864_v17 }
 0x251   : > { %v2867_v28 = vpop.f32.mrb[28].mxu1 }
 0x252   : > { %v2868_v59 = vpop.f32.mrb[29].mxu1 }
 0x253   : > { %v2869_v47 = vadd.f32 %v2868_v59, %v2867_v28  ;;  %v2870_v27 = vpop.f32.mrb[30].mxu1 }
 0x254   : > { %v2871_v13 = vpop.f32.mrb[31].mxu1 }
 0x259   : > { %v2889_v34 = vpop.f32.mrb[32].mxu1 }
 0x25a   : > { %v2890_v1 = vpop.f32.mrb[33].mxu1 }
 0x25b   : > { %v2891_v60 = vadd.f32 %v2890_v1, %v2889_v34  ;;  %v2892_v49 = vpop.f32.mrb[34].mxu1 }
 0x25c   : > { %v2893_v30 = vpop.f32.mrb[35].mxu1 }
 0x25d   : > { %v2894_v35 = vadd.f32 %v2893_v30, %v2892_v49  ;;  %v2387_v45 = vadd.f32 %v2891_v60, %v2851_v61 }
 0x25f   : > { %v2390_v9 = vadd.f32 %v2894_v35, %v2854_v12 }
 0x261   : > { %v2895_v3 = vpop.f32.mrb[36].mxu1 }
 0x262   : > { %v2896_v36 = vpop.f32.mrb[37].mxu1 }
 0x263   : > { %v2897_v57 = vadd.f32 %v2896_v36, %v2895_v3  ;;  %v2898_v22 = vpop.f32.mrb[38].mxu1 }
 0x264   : > { %v2899_v37 = vpop.f32.mrb[39].mxu1 }
 0x265   : > { %v2900_v62 = vadd.f32 %v2899_v37, %v2898_v22  ;;  %v4496_v32 = vadd.f32 %v2897_v57, %v2857_v2 }
 0x267   : > { %v4498_v8 = vadd.f32 %v2900_v62, %v2860_v33 }
 0x269   : > { %v2901_v7 = vpop.f32.mrb[40].mxu1 }
 0x26a   : > { %v2902_v31 = vpop.f32.mrb[41].mxu1 }
 0x26b   : > { %v2903_v56 = vadd.f32 %v2902_v31, %v2901_v7  ;;  %v2904_v46 = vpop.f32.mrb[42].mxu1 }
 0x26c   : > { %v2905_v58 = vpop.f32.mrb[43].mxu1 }
 0x26d   : > { %v2906_v52 = vadd.f32 %v2905_v58, %v2904_v46  ;;  %v4500_v51 = vadd.f32 %v2903_v56, %v2863_v24 }
 0x26f   : > { %v4502_v4 = vadd.f32 %v2906_v52, %v2866_v26 }
 0x270   : > { %v2180_v43 = vpop.f32.mrb[0].mxu0 }
 0x271   : > { %v2907_v5 = vpop.f32.mrb[44].mxu1  ;;  %v2913_v54 = vadd.f32 %v4468_v20, %v2180_v43  ;;  %v2182_v40 = vpop.f32.mrb[1].mxu0 }
 0x272   : > { %v2908_v41 = vpop.f32.mrb[45].mxu1  ;;  %v2914_v61 = vadd.f32 %v4470_v15, %v2182_v40  ;;  %v2184_v48 = vpop.f32.mrb[2].mxu0 }
 0x273   : > { %v2909_v39 = vadd.f32 %v2908_v41, %v2907_v5  ;;  %v2910_v12 = vpop.f32.mrb[46].mxu1  ;;  %2480 = vst [vmem:[%s3649_s29] sm:$0xff] %v2913_v54  ;;  %v2915_v14 = vadd.f32 %v4472_v10, %v2184_v48  ;;  %v2186_v29 = vpop.f32.mrb[3].mxu0 }
 0x274   : > { %v2911_v2 = vpop.f32.mrb[47].mxu1  ;;  %2481 = vst [vmem:[%s3649_s29 + $0x8] sm:$0xff] %v2914_v61  ;;  %v2916_v21 = vadd.f32 %v4474_v11, %v2186_v29 }
 0x275   : > { %v2411_v20 = vadd.f32 %v2909_v39, %v2869_v47  ;;  %2484 = vst [vmem:[%s3649_s29 + $0x18] sm:$0xff] %v2915_v14 }
 0x276   : > { %2485 = vst [vmem:[%s3649_s29 + $0x20] sm:$0xff] %v2916_v21 }
 0x278   : > { %v2190_v44 = vpop.f32.mrb[4].mxu0 }
 0x279   : > { %v2917_v15 = vadd.f32 %v4476_v6, %v2190_v44  ;;  %v2192_v33 = vpop.f32.mrb[5].mxu0 }
 0x27a   : > { %v2918_v42 = vadd.f32 %v4478_v19, %v2192_v33  ;;  %v2194_v16 = vpop.f32.mrb[6].mxu0 }
 0x27b   : > { %2487 = vst [vmem:[%s3649_s29 + $0x30] sm:$0xff] %v2917_v15  ;;  %v2919_v10 = vadd.f32 %v4480_v63, %v2194_v16  ;;  %v2196_v24 = vpop.f32.mrb[7].mxu0 }
 0x27c   : > { %2488 = vst [vmem:[%s3649_s29 + $0x38] sm:$0xff] %v2918_v42  ;;  %v2920_v17 = vadd.f32 %v4482_v23, %v2196_v24 }
 0x27d   : > { %2490 = vst [vmem:[%s3649_s29 + $0x48] sm:$0xff] %v2919_v10 }
 0x27e   : > { %2491 = vst [vmem:[%s3649_s29 + $0x50] sm:$0xff] %v2920_v17 }
 0x280   : > { %v2200_v11 = vpop.f32.mrb[8].mxu0 }
 0x281   : > { %v2450_v53 = vpop.f32.mrb[48].mxu1  ;;  %v2921_v6 = vadd.f32 %v4484_v50, %v2200_v11  ;;  %v2202_v26 = vpop.f32.mrb[9].mxu0 }
 0x282   : > { %v2451_v19 = vadd.f32 %v2450_v53, %v2387_v45  ;;  %v2452_v63 = vpop.f32.mrb[49].mxu1  ;;  %v2922_v28 = vadd.f32 %v4486_v25, %v2202_v26  ;;  %v2204_v59 = vpop.f32.mrb[10].mxu0 }
 0x283   : > { %v2453_v47 = vpop.f32.mrb[50].mxu1  ;;  %2493 = vst [vmem:[%s3649_s29 + $0x60] sm:$0xff] %v2921_v6  ;;  %v2923_v23 = vadd.f32 %v4488_v0, %v2204_v59  ;;  %v2206_v13 = vpop.f32.mrb[11].mxu0 }
 0x284   : > { %2483 = vst.msk [vmem:[%s3649_s29 + $0x10] sm:$0xff] %vm2482_vm0, %v2451_v19  ;;  %v2454_v27 = vadd.f32 %v2453_v47, %v2390_v9  ;;  %v2455_v34 = vpop.f32.mrb[51].mxu1  ;;  %2494 = vst [vmem:[%s3649_s29 + $0x68] sm:$0xff] %v2922_v28  ;;  %v2924_v50 = vadd.f32 %v4490_v18, %v2206_v13 }
 0x285   : > { %2496 = vst [vmem:[%s3649_s29 + $0x78] sm:$0xff] %v2923_v23 }
 0x286   : > { %2486 = vst.msk [vmem:[%s3649_s29 + $0x28] sm:$0xff] %vm2482_vm0, %v2454_v27  ;;  %2497 = vst [vmem:[%s3649_s29 + $0x80] sm:$0xff] %v2924_v50 }
 0x288   : > { %v2210_v25 = vpop.f32.mrb[12].mxu0 }
 0x289   : > { %v2458_v1 = vpop.f32.mrb[52].mxu1  ;;  %v2925_v60 = vadd.f32 %v4492_v38, %v2210_v25  ;;  %v2212_v49 = vpop.f32.mrb[13].mxu0 }
 0x28a   : > { %v2459_v0 = vadd.f32 %v2458_v1, %v4496_v32  ;;  %v2460_v30 = vpop.f32.mrb[53].mxu1  ;;  %v2926_v35 = vadd.f32 %v4494_v55, %v2212_v49  ;;  %v2214_v45 = vpop.f32.mrb[14].mxu0 }
 0x28b   : > { %v2461_v18 = vpop.f32.mrb[54].mxu1  ;;  %2499 = vst [vmem:[%s3649_s29 + $0x90] sm:$0x1] %v2925_v60  ;;  %v2215_v3 = vpop.f32.mrb[15].mxu0 }
 0x28c   : > { %2489 = vst.msk [vmem:[%s3649_s29 + $0x40] sm:$0xff] %vm2482_vm0, %v2459_v0  ;;  %v2462_v9 = vadd.f32 %v2461_v18, %v4498_v8  ;;  %v2463_v36 = vpop.f32.mrb[55].mxu1  ;;  %2500 = vst [vmem:[%s3649_s29 + $0x98] sm:$0x1] %v2926_v35 }
 0x28e   : > { %2492 = vst.msk [vmem:[%s3649_s29 + $0x58] sm:$0xff] %vm2482_vm0, %v2462_v9 }
 0x291   : > { %v2466_v38 = vpop.f32.mrb[56].mxu1 }
 0x292   : > { %v2467_v57 = vadd.f32 %v2466_v38, %v4500_v51  ;;  %v2468_v22 = vpop.f32.mrb[57].mxu1 }
 0x293   : > { %v2469_v37 = vpop.f32.mrb[58].mxu1 }
 0x294   : > { %2495 = vst.msk [vmem:[%s3649_s29 + $0x70] sm:$0xff] %vm2482_vm0, %v2467_v57  ;;  %v2470_v55 = vadd.f32 %v2469_v37, %v4502_v4  ;;  %v2471_v62 = vpop.f32.mrb[59].mxu1 }
 0x296   : > { %2498 = vst.msk [vmem:[%s3649_s29 + $0x88] sm:$0xff] %vm2482_vm0, %v2470_v55 }
 0x299   : > { %v2474_v32 = vpop.f32.mrb[60].mxu1 }
 0x29a   : > { %v2475_v8 = vadd.f32 %v2474_v32, %v2411_v20  ;;  %v2476_v7 = vpop.f32.mrb[61].mxu1 }
 0x29b   : > { %v2477_v31 = vpop.f32.mrb[62].mxu1 }
 0x29c   : > { %2502 = vst.msk [vmem:[%s3649_s29 + $0xa0] sm:$0x1] %vm2501_vm1, %v2475_v8  ;;  %v2478_v56 = vpop.f32.mrb[63].mxu1 }
 0x29d PF: > { %s19_s20 = sadd.s32 1, %s3423_s20   ;;  %s4684_s15 = smov %s3407_s16 }
 0x29e   : > { %p16_p1 = scmp.ge.s32.totalorder %s19_s20, 4   ;;  %s4685_s16 = smov %s3411_s17 }
 0x29f   : > { %s4686_s17 = smov %s3590_s28  ;;  %s4687_s18 = smov %s3419_s19 }
 0x2a0   : > { %s4688_s19 = smov %s4690_s14  ;;  %18 = sbr.rel (!%p16_p1) target bundleno = 6 (0x6), region = 94 }
 0x2a7   :  { %2530 = vsyncpa [#allocation4], 1 }
 0x2a8   :  { %2532 = vsyncpa [#allocation4 + $0x1], 1 }
 0x2a9   :  { %2533 = vsyncpa [#allocation6], 1 }
 0x2aa   :  { %2534 = vsyncpa [#allocation9], 1 }
 0x2ab   :  { %2536 = vsyncpa [#allocation9 + $0x1], 1 }

</bundles_post_ra>
